<compile_context>
chip_gen: v6e
topology: v6e:2x2x1
jax: 0.10.0
libtpu: 0.0.40
codegen_flags: <defaults>
</compile_context>

<pallas_src>
import math
from functools import partial

import jax
import jax.numpy as jnp
from jax.experimental import pallas as pl
from jax.experimental.pallas import tpu as pltpu


def _round_up(x: int, m: int) -> int:
    return ((x + m - 1) // m) * m


def _pixel_norm(x):
    return x * jax.lax.rsqrt(jnp.mean(x * x, axis=-1, keepdims=True) + 1e-8)


def _style_resident_kernel(w_ref, b_ref, mean_ref, z_ref, o_ref, *,
                           n_mlp, tr, c_b, c_m, neg_slope, compute_dtype):
    """Resident-weight kernel (num_blocks > 1).

    w_ref: (n_mlp, D, D) pre-scaled, [in, out] layout; b_ref: (n_mlp, 1, D) f32;
    mean_ref: (8, D) (row 0 is the real mean latent); z_ref/o_ref: (tr, D).
    """
    zx = z_ref[...].astype(jnp.float32)            # (tr, D)
    mx = mean_ref[...].astype(jnp.float32)         # (8, D)
    # Concatenate the mean rows onto the batch tile so each weight tile is
    # pushed through the MXU once per layer (not twice).
    x = jnp.concatenate([zx, mx], axis=0)          # (tr + 8, D)
    x = _pixel_norm(x)
    for l in range(n_mlp):
        h = jnp.dot(x.astype(compute_dtype), w_ref[l],
                    preferred_element_type=jnp.float32) + b_ref[l]
        x = jnp.maximum(h, neg_slope * h)          # leaky_relu (gain folded out)
    w_batch = x[:tr]
    w_mean = x[tr:tr + 1]                          # only padded mean row 0 is real
    o_ref[...] = (c_b * w_batch + c_m * w_mean).astype(o_ref.dtype)


def _style_streaming_kernel(w_ref, b_ref, mean_ref, z_ref, o_ref, act_ref, *,
                            n_mlp, tr, c_b, c_m, neg_slope, compute_dtype):
    """Per-layer weight-streaming kernel (single row block).

    Grid axis = layer index. w_ref: (1, D, D); b_ref: (1, 1, D); mean_ref: (8, D);
    z_ref/o_ref: (tr, D); act_ref: VMEM scratch (tr + 8, D) f32 carried across layers.
    """
    l = pl.program_id(0)

    @pl.when(l == 0)
    def _():
        zx = z_ref[...].astype(jnp.float32)
        mx = mean_ref[...].astype(jnp.float32)
        act_ref[...] = _pixel_norm(jnp.concatenate([zx, mx], axis=0))

    h = jnp.dot(act_ref[...].astype(compute_dtype), w_ref[0],
                preferred_element_type=jnp.float32) + b_ref[0]
    act_ref[...] = jnp.maximum(h, neg_slope * h)

    @pl.when(l == n_mlp - 1)
    def _():
        y = act_ref[...]
        o_ref[...] = (c_b * y[:tr] + c_m * y[tr:tr + 1]).astype(o_ref.dtype)


def stylegan2_transformer(zcode, weights, biases, mean_wcode, *,
                          lr_mul=0.01, tile_rows=256, weight_dtype=jnp.bfloat16):
    """zcode: [B, 1, 1, D]; weights: [n_mlp, D, D] (torch [out, in] layout);
    biases: [n_mlp, D]; mean_wcode: [1, D]. Returns wcode [B, 1, 1, D]."""
    n_mlp, d_out, d_in = weights.shape
    assert d_out == d_in, "mapping network is square (w_space_dim -> w_space_dim)"
    D = d_in
    B = zcode.shape[0]
    assert B >= 1

    z2d = zcode.reshape(B, D)

    # Row tiling: aim for >= 2 row blocks (so both v7x TensorCores get work),
    # capped at tile_rows (256 fills the 256-wide v6e/v7x MXU per weight push).
    tr = max(8, min(tile_rows, _round_up(-(-B // 2), 8)))
    r_pad = _round_up(B, tr)
    num_blocks = r_pad // tr

    z_pad = jnp.pad(z2d, ((0, r_pad - B), (0, 0)))
    mean_pad = jnp.pad(mean_wcode.reshape(1, D), ((0, 7), (0, 0)))

    # Fold EqualLinear scale, lr_mul and the sqrt(2) activation gain into the
    # parameters (in f32, BEFORE any bf16 cast). Layer l's gain is folded into
    # layer l+1's weights; the final gain is folded into the blend coefficients.
    scale = 1.0 / math.sqrt(D) * lr_mul
    gain = 2.0 ** 0.5
    layer_scale = jnp.concatenate(
        [jnp.full((1, 1, 1), scale, jnp.float32),
         jnp.full((n_mlp - 1, 1, 1), scale * gain, jnp.float32)], axis=0)
    w_eff = (jnp.swapaxes(weights, 1, 2).astype(jnp.float32) *
             layer_scale).astype(weight_dtype)                  # [n_mlp, in, out]
    b_eff = (biases.astype(jnp.float32) * lr_mul).reshape(n_mlp, 1, D)

    c_b = 0.75 * gain
    c_m = 0.25 * gain
    compute_dtype = jnp.dtype(weight_dtype)
    act_itemsize = jnp.dtype(zcode.dtype).itemsize
    w_itemsize = jnp.dtype(weight_dtype).itemsize

    if num_blocks == 1:
        # Tiny-batch regime: stream one weight tile per layer so the weight DMA
        # pipelines against the matmuls instead of being fully exposed upfront.
        kernel = partial(_style_streaming_kernel, n_mlp=n_mlp, tr=tr,
                         c_b=c_b, c_m=c_m, neg_slope=0.2,
                         compute_dtype=compute_dtype)
        vmem_limit = int(2 * D * D * w_itemsize            # double-buffered weight tile
                         + 4 * tr * D * act_itemsize       # z + out buffers
                         + (tr + 8) * D * 4                # activation scratch
                         + (8 << 20))                      # temps / headroom
        out = pl.pallas_call(
            kernel,
            out_shape=jax.ShapeDtypeStruct((r_pad, D), zcode.dtype),
            grid_spec=pltpu.PrefetchScalarGridSpec(
                num_scalar_prefetch=0,
                grid=(n_mlp,),
                in_specs=[
                    pl.BlockSpec((1, D, D), lambda l: (l, 0, 0)),   # per-layer weights
                    pl.BlockSpec((1, 1, D), lambda l: (l, 0, 0)),   # per-layer bias
                    pl.BlockSpec((8, D), lambda l: (0, 0),
                                 pipeline_mode=pl.Buffered(1)),     # mean latent (resident)
                    pl.BlockSpec((tr, D), lambda l: (0, 0),
                                 pipeline_mode=pl.Buffered(1)),     # zcode rows (resident)
                ],
                out_specs=pl.BlockSpec((tr, D), lambda l: (0, 0)),
                scratch_shapes=[pltpu.VMEM((tr + 8, D), jnp.float32)],
            ),
            compiler_params=pltpu.CompilerParams(
                dimension_semantics=("arbitrary",),
                vmem_limit_bytes=vmem_limit,
            ),
        )(w_eff, b_eff, mean_pad, z_pad)
    else:
        # Batch regime: weight stack stays VMEM-resident (single-buffered),
        # only activation row tiles stream over a parallel row grid.
        kernel = partial(_style_resident_kernel, n_mlp=n_mlp, tr=tr,
                         c_b=c_b, c_m=c_m, neg_slope=0.2,
                         compute_dtype=compute_dtype)
        vmem_limit = int(n_mlp * D * D * w_itemsize        # resident weight stack (1 buffer)
                         + 4 * tr * D * act_itemsize       # z + out, double-buffered
                         + (8 << 20))                      # biases/mean/temps/headroom
        out = pl.pallas_call(
            kernel,
            out_shape=jax.ShapeDtypeStruct((r_pad, D), zcode.dtype),
            grid_spec=pltpu.PrefetchScalarGridSpec(
                num_scalar_prefetch=0,
                grid=(num_blocks,),
                in_specs=[
                    pl.BlockSpec((n_mlp, D, D), lambda i: (0, 0, 0),
                                 pipeline_mode=pl.Buffered(1)),     # weights (resident)
                    pl.BlockSpec((n_mlp, 1, D), lambda i: (0, 0, 0),
                                 pipeline_mode=pl.Buffered(1)),     # biases (resident)
                    pl.BlockSpec((8, D), lambda i: (0, 0),
                                 pipeline_mode=pl.Buffered(1)),     # mean latent (resident)
                    pl.BlockSpec((tr, D), lambda i: (i, 0)),        # zcode row tile
                ],
                out_specs=pl.BlockSpec((tr, D), lambda i: (i, 0)),
            ),
            compiler_params=pltpu.CompilerParams(
                dimension_semantics=("parallel",),
                vmem_limit_bytes=vmem_limit,
            ),
        )(w_eff, b_eff, mean_pad, z_pad)

    return out[:B].reshape(B, 1, 1, D)


def _reference(zcode, weights, biases, mean_wcode, *, lr_mul=0.01):
    """Plain-JAX mirror of the PyTorch module, for correctness checking."""
    n_mlp, _, D = weights.shape
    scale = 1.0 / math.sqrt(D) * lr_mul
    B = zcode.shape[0]

    def style(x):
        x = x * jax.lax.rsqrt(jnp.mean(x * x, axis=1, keepdims=True) + 1e-8)
        for l in range(n_mlp):
            h = x @ (weights[l] * scale).T + biases[l] * lr_mul
            x = jnp.where(h >= 0.0, h, 0.2 * h) * (2.0 ** 0.5)
        return x

    w_batch = style(zcode.reshape(B, D))
    w_mean = style(mean_wcode.reshape(1, D))
    return (0.75 * w_batch + 0.25 * w_mean).reshape(B, 1, 1, D)


if __name__ == "__main__":
    key = jax.random.PRNGKey(0)
    k_z, k_w, k_b, k_m, k_z2 = jax.random.split(key, 5)

    D, N_MLP, LR_MUL = 512, 8, 0.01    # module defaults: w_space_dim=512, n_mlp=8

    # EqualLinearWithLeakyRelu init: weight = randn(out, in) / lr_mul; bias init
    # is zeros in the module -- use small nonzero values so the bias path is
    # actually exercised numerically.
    weights = jax.random.normal(k_w, (N_MLP, D, D), dtype=jnp.float32) / LR_MUL
    biases = 0.1 * jax.random.normal(k_b, (N_MLP, D), dtype=jnp.float32)
    # mean_wcode buffer: torch.randn(4096, D).mean(0, keepdim=True) equivalent.
    # TODO(synk): torch RNG stream for parameter/buffer init cannot be matched
    # bit-exactly; jax.random is used (forward math is identical for any params).
    mean_wcode = jnp.mean(jax.random.normal(k_m, (4096, D), dtype=jnp.float32),
                          axis=0, keepdims=True)

    def check(B, zkey, weight_dtype, tol, tag):
        zcode = jax.random.normal(zkey, (B, 1, 1, D), dtype=jnp.float32)
        out = jax.block_until_ready(
            stylegan2_transformer(zcode, weights, biases, mean_wcode,
                                  lr_mul=LR_MUL, weight_dtype=weight_dtype))
        ref = _reference(zcode, weights, biases, mean_wcode, lr_mul=LR_MUL)
        assert out.shape == (B, 1, 1, D) and out.dtype == zcode.dtype
        rel_err = float(jnp.max(jnp.abs(out - ref)) / (jnp.max(jnp.abs(ref)) + 1e-6))
        assert rel_err < tol, f"{tag}: relative error too large: {rel_err}"

    # Tiny batch (module's typical usage) -> per-layer weight-streaming kernel.
    check(2, k_z, jnp.float32, 1e-3, "streaming/f32")
    check(2, k_z, jnp.bfloat16, 3e-2, "streaming/bf16")
    # Larger batch -> resident-weight kernel over a real (parallel) row grid.
    check(40, k_z2, jnp.float32, 1e-3, "resident/f32")
    check(40, k_z2, jnp.bfloat16, 3e-2, "resident/bf16")

    print("KERNEL_OK")
</pallas_src>

<mosaic_0001>
module attributes {stable_mosaic.version = 11 : i64} {
  func.func @_style_streaming_kernel(%arg0: i32, %arg1: memref<1x512x512xf32, #tpu.memory_space<vmem>>, %arg2: memref<1x1x512xf32, #tpu.memory_space<vmem>>, %arg3: memref<8x512xf32, #tpu.memory_space<vmem>>, %arg4: memref<8x512xf32, #tpu.memory_space<vmem>>, %arg5: memref<8x512xf32, #tpu.memory_space<vmem>>, %arg6: memref<16x512xf32, #tpu.memory_space<vmem>>) attributes {dimension_semantics = [#tpu.dimension_semantics<arbitrary>], iteration_bounds = array<i64: 8>, scalar_prefetch = 0 : i64, scratch_operands = 1 : i64, tpu.core_type = #tpu.core_type<tc>, window_params = [{transform_indices = @transform_0, window_bounds = array<i64: 1, 512, 512>}, {transform_indices = @transform_1, window_bounds = array<i64: 1, 1, 512>}, {pipeline_mode = #tpu.pipeline_mode<synchronous>, transform_indices = @transform_2, window_bounds = array<i64: 8, 512>}, {pipeline_mode = #tpu.pipeline_mode<synchronous>, transform_indices = @transform_3, window_bounds = array<i64: 8, 512>}, {pipeline_mode = #tpu.pipeline_mode<synchronous>, transform_indices = @transform_4, window_bounds = array<i64: 8, 512>}]} {
    %c0_i32 = arith.constant 0 : i32
    %0 = arith.cmpi eq, %arg0, %c0_i32 : i32
    %1 = arith.extui %0 : i1 to i32
    %c0_i32_0 = arith.constant 0 : i32
    %2 = arith.cmpi ne, %1, %c0_i32_0 : i32
    scf.if %2 {
      %c0_12 = arith.constant 0 : index
      %c0_13 = arith.constant 0 : index
      %18 = vector.load %arg4[%c0_12, %c0_13] : memref<8x512xf32, #tpu.memory_space<vmem>>, vector<8x512xf32>
      %c0_14 = arith.constant 0 : index
      %c0_15 = arith.constant 0 : index
      %19 = vector.load %arg3[%c0_14, %c0_15] : memref<8x512xf32, #tpu.memory_space<vmem>>, vector<8x512xf32>
      %20 = tpu.concatenate %18, %19 in 0 : vector<8x512xf32>, vector<8x512xf32> -> vector<16x512xf32>
      %21 = arith.mulf %20, %20 : vector<16x512xf32>
      %cst_16 = arith.constant dense<0.000000e+00> : vector<16xf32>
      %22 = vector.multi_reduction <add>, %21, %cst_16 [1] : vector<16x512xf32> to vector<16xf32>
      %23 = vector.shape_cast %22 : vector<16xf32> to vector<16x1xf32>
      %cst_17 = arith.constant 5.120000e+02 : f32
      %24 = vector.broadcast %cst_17 : f32 to vector<16x1xf32>
      %25 = arith.divf %23, %24 : vector<16x1xf32>
      %cst_18 = arith.constant 9.99999993E-9 : f32
      %26 = vector.broadcast %cst_18 : f32 to vector<16x1xf32>
      %27 = arith.addf %25, %26 : vector<16x1xf32>
      %28 = math.rsqrt %27 : vector<16x1xf32>
      %29 = vector.broadcast %28 : vector<16x1xf32> to vector<16x512xf32>
      %30 = arith.mulf %20, %29 : vector<16x512xf32>
      %c0_19 = arith.constant 0 : index
      %c0_20 = arith.constant 0 : index
      %31 = vector.load %arg6[%c0_19, %c0_20] : memref<16x512xf32, #tpu.memory_space<vmem>>, vector<16x512xf32>
      tpu.vector_store %arg6[%c0_19, %c0_20], %30 {strides = array<i32>} : memref<16x512xf32, #tpu.memory_space<vmem>>, vector<16x512xf32>,
    } else {
    }
    %c0 = arith.constant 0 : index
    %c0_1 = arith.constant 0 : index
    %3 = vector.load %arg6[%c0, %c0_1] : memref<16x512xf32, #tpu.memory_space<vmem>>, vector<16x512xf32>
    %c0_2 = arith.constant 0 : index
    %c0_3 = arith.constant 0 : index
    %c0_4 = arith.constant 0 : index
    %4 = vector.load %arg1[%c0_2, %c0_3, %c0_4] : memref<1x512x512xf32, #tpu.memory_space<vmem>>, vector<1x512x512xf32>
    %5 = vector.shape_cast %4 : vector<1x512x512xf32> to vector<512x512xf32>
    %cst = arith.constant dense<0.000000e+00> : vector<16x512xf32>
    %6 = tpu.matmul %3, %5, %cst {dimension_numbers = #tpu.dot_dimension_numbers<[1], [0], [0], [1], [0, 0, 1, 1], [], []>} : vector<16x512xf32>, vector<512x512xf32>, vector<16x512xf32> -> vector<16x512xf32>
    %c0_5 = arith.constant 0 : index
    %c0_6 = arith.constant 0 : index
    %c0_7 = arith.constant 0 : index
    %7 = vector.load %arg2[%c0_5, %c0_6, %c0_7] : memref<1x1x512xf32, #tpu.memory_space<vmem>>, vector<1x1x512xf32>
    %8 = vector.shape_cast %7 : vector<1x1x512xf32> to vector<1x512xf32>
    %9 = vector.broadcast %8 : vector<1x512xf32> to vector<16x512xf32>
    %10 = arith.addf %6, %9 : vector<16x512xf32>
    %cst_8 = arith.constant 2.000000e-01 : f32
    %11 = vector.broadcast %cst_8 : f32 to vector<16x512xf32>
    %12 = arith.mulf %11, %10 : vector<16x512xf32>
    %13 = arith.maximumf %10, %12 : vector<16x512xf32>
    %c0_9 = arith.constant 0 : index
    %c0_10 = arith.constant 0 : index
    %14 = vector.load %arg6[%c0_9, %c0_10] : memref<16x512xf32, #tpu.memory_space<vmem>>, vector<16x512xf32>
    tpu.vector_store %arg6[%c0_9, %c0_10], %13 {strides = array<i32>} : memref<16x512xf32, #tpu.memory_space<vmem>>, vector<16x512xf32>,
    %c7_i32 = arith.constant 7 : i32
    %15 = arith.cmpi eq, %arg0, %c7_i32 : i32
    %16 = arith.extui %15 : i1 to i32
    %c0_i32_11 = arith.constant 0 : i32
    %17 = arith.cmpi ne, %16, %c0_i32_11 : i32
    scf.if %17 {
      %c0_12 = arith.constant 0 : index
      %c0_13 = arith.constant 0 : index
      %18 = vector.load %arg6[%c0_12, %c0_13] : memref<16x512xf32, #tpu.memory_space<vmem>>, vector<16x512xf32>
      %19 = vector.extract_strided_slice %18 {offsets = [0, 0], sizes = [8, 512], strides = [1, 1]} : vector<16x512xf32> to vector<8x512xf32>
      %cst_14 = arith.constant 1.06066012 : f32
      %20 = vector.broadcast %cst_14 : f32 to vector<8x512xf32>
      %21 = arith.mulf %20, %19 : vector<8x512xf32>
      %22 = vector.extract_strided_slice %18 {offsets = [8, 0], sizes = [1, 512], strides = [1, 1]} : vector<16x512xf32> to vector<1x512xf32>
      %cst_15 = arith.constant 0.353553385 : f32
      %23 = vector.broadcast %cst_15 : f32 to vector<1x512xf32>
      %24 = arith.mulf %23, %22 : vector<1x512xf32>
      %25 = vector.broadcast %24 : vector<1x512xf32> to vector<8x512xf32>
      %26 = arith.addf %21, %25 : vector<8x512xf32>
      %c0_16 = arith.constant 0 : index
      %c0_17 = arith.constant 0 : index
      %27 = vector.load %arg5[%c0_16, %c0_17] : memref<8x512xf32, #tpu.memory_space<vmem>>, vector<8x512xf32>
      tpu.vector_store %arg5[%c0_16, %c0_17], %26 {strides = array<i32>} : memref<8x512xf32, #tpu.memory_space<vmem>>, vector<8x512xf32>,
    } else {
    }
    return
  }
  func.func @transform_0(%arg0: i32) -> (i32, i32, i32) {
    %c0_i32 = arith.constant 0 : i32
    %c0_i32_0 = arith.constant 0 : i32
    %c0_i32_1 = arith.constant 0 : i32
    return %arg0, %c0_i32, %c0_i32_0 : i32, i32, i32
  }
  func.func @transform_1(%arg0: i32) -> (i32, i32, i32) {
    %c0_i32 = arith.constant 0 : i32
    %c0_i32_0 = arith.constant 0 : i32
    %c0_i32_1 = arith.constant 0 : i32
    return %arg0, %c0_i32, %c0_i32_0 : i32, i32, i32
  }
  func.func @transform_2(%arg0: i32) -> (i32, i32) {
    %c0_i32 = arith.constant 0 : i32
    %c0_i32_0 = arith.constant 0 : i32
    %c0_i32_1 = arith.constant 0 : i32
    return %c0_i32, %c0_i32_0 : i32, i32
  }
  func.func @transform_3(%arg0: i32) -> (i32, i32) {
    %c0_i32 = arith.constant 0 : i32
    %c0_i32_0 = arith.constant 0 : i32
    %c0_i32_1 = arith.constant 0 : i32
    return %c0_i32, %c0_i32_0 : i32, i32
  }
  func.func @transform_4(%arg0: i32) -> (i32, i32) {
    %c0_i32 = arith.constant 0 : i32
    %c0_i32_0 = arith.constant 0 : i32
    %c0_i32_1 = arith.constant 0 : i32
    return %c0_i32, %c0_i32_0 : i32, i32
  }
}

</mosaic_0001>

<bundles_post_ra>
// kernel: tpu_custom_call.1
= control target key start
LH: loop header
LB: loop body
LE: loop exit
PB: predicated region body
PF: predicated region fallthrough
CT: control target
= control target key end

     0   :  { %s1875_s0 = inlined_call_operand.hbm [shape: f32[8,512,512], index: 0, kind: input, shape index: {}]   ;;  %s1876_s1 = inlined_call_operand.hbm [shape: f32[8,1,512], index: 1, kind: input, shape index: {}]   ;;  %s1877_s2 = inlined_call_operand.hbm [shape: f32[8,512], index: 2, kind: input, shape index: {}]   ;;  %s1878_s3 = inlined_call_operand.hbm [shape: f32[8,512], index: 3, kind: input, shape index: {}]   ;;  %s1879_s4 = inlined_call_operand.hbm [shape: f32[8,512], index: 4, kind: output, shape index: {}]  }
   0x1   :  { %1884 = sst [smem:[#allocation17_spill]] %s1875_s0 }
   0x2   :  { %9 = vsyncpa [#allocation4], 0 }
   0x3   :  { %11 = vsyncpa [#allocation4 + $0x1], 0 }
   0x4   :  { %12 = vsyncpa [#allocation7], 0 }
   0x5   :  { %14 = vsyncpa [#allocation7 + $0x1], 0 }
   0x6   :  { %15 = vsyncpa [#allocation10], 0 }
   0x7   :  { %16 = vsyncpa [#allocation5], 0  ;;  %s1399_s15 = smov 0   ;;  %s1401_s16 = smov 0  }
   0x8   :  { %s1403_s17 = smov 0   ;;  %s1405_s18 = smov 0  }
   0x9 LB: > { %s1418_s19 = sadd.s32 4294967295, %s1365_s18   ;;  %s1421_s20 = sadd.s32 1, %s1365_s18   ;;  %s1365_s18 = sphi %s1405_s18, %s1902_s18   ;;  %s1361_s17 = sphi %s1403_s17, %s1901_s17   ;;  %s1357_s16 = sphi %s1401_s16, %s1900_s16   ;;  %s1353_s15 = sphi %s1399_s15, %s1899_s15  }
   0xa   : > { %s26_s21 = ssub.s32 %s1365_s18, %s1421_s20  ;;  %s29_s22 = sadd.s32 1, %s1361_s17 }
   0xb   : > { %p27_p0 = scmp.eq.s32.totalorder %s26_s21, 0  ;;  %p36_p1 = scmp.ne.s32.totalorder %s1361_s17, %s1357_s16 }
   0xc   : > { %p37_p2 = scmp.eq.s32.totalorder %s1365_s18, 0  ;;  %p42_p3 = scmp.ne.s32.totalorder %s1357_s16, %s1353_s15 }
   0xd   : > { %s1431_s23 = scalar_select %p27_p0, %s1361_s17, %s29_s22  }
   0xe   : > { %p1433_p4 = por %p37_p2, %p36_p1  ;;  %p1880_p5 = scmp.eq.s32.totalorder %s1418_s19, 0 }
   0xf   : > { %p1082_p6 = scmp.ge.s32.totalorder %s1365_s18, 1  ;;  %p142_p7 = scmp.lt.s32.totalorder %s1365_s18, 9 }
  0x10   : > { %p1442_p8 = por %p1880_p5, %p42_p3  ;;  %s1367_s27 = smov [#allocation8]  }
  0x11   : > { %p1447_p10 = pnand %p1082_p6, %p142_p7  ;;  %s155_s28 = sshll.u32 %s1367_s27, 4  ;;  %s156_s28 = int_to_ptr.vmem [resolvable:$true] %s155_s28 }
  0x12   : > { %s1886_s25 = scalar_select %p1442_p8, 1, 0 }
  0x13   : > { %s1887_s26 = scalar_select %p1447_p10, 1, 0 }
  0x14   : > { %p1121_p11 = pneg %p1447_p10  ;;  %p1137_p12 = scmp.lt.s32.totalorder %s1365_s18, 8 }
  0x15   : > { %s1368_s30 = smov [#allocation9]   ;;  %s1467_s7 = sand.u32 1, %s1361_s17  }
  0x16   : > { %p1456_p13 = pnand %p1121_p11, %p1880_p5  ;;  %s166_s5 = sshll.u32 %s1368_s30, 4  ;;  %s167_s5 = int_to_ptr.vmem [resolvable:$true] %s166_s5 }
  0x17   : > { %p1462_p0 = pnand %p1137_p12, %p1433_p4  ;;  %s1194_s8 = scalar_lea.vmem %s156_s28, 512 }
  0x18   : > { %p1185_p1 = pneg %p1456_p13  ;;  %p1195_p2 = scmp.ne.s32.totalorder %s156_s28, %s1194_s8 }
  0x19   : > { %s1889_s6 = scalar_select %p1462_p0, 1, 0 }
  0x1a   : > { %p1197_p3 = pnand %p1195_p2, %p1185_p1  ;;  %p1202_p7 = scmp.lt.s32.totalorder %s156_s28, %s156_s28 }
  0x1b   : > { %p1203_p11 = scmp.lt.s32.totalorder %s1194_s8, %s1194_s8 }
  0x1c   : > { %p1198_p6 = pneg %p1197_p3 }
  0x1d   : > { %p1204_p9 = por %p1203_p11, %p1202_p7 }
  0x1f   : > { %p1205_p5 = pnand %p1204_p9, %p1198_p6 }
  0x21   : > { %1208 = shalt.err (!%p1205_p5)
}
  0x22   : > { %1124 = dma.hbm_to_vmem [thread:$0]  (!%p1456_p13), %s1877_s2, 512, %s156_s28, [#allocation7]  }
  0x23   : > { %s1220_s11 = scalar_lea.vmem %s167_s5, 512  ;;  %p1228_p2 = scmp.lt.s32.totalorder %s167_s5, %s167_s5 }
  0x24   : > { %p1221_p4 = scmp.ne.s32.totalorder %s167_s5, %s1220_s11  ;;  %p1229_p3 = scmp.lt.s32.totalorder %s1220_s11, %s1220_s11 }
  0x26   : > { %p1223_p12 = pnand %p1221_p4, %p1185_p1  ;;  %p1230_p10 = por %p1229_p3, %p1228_p2 }
  0x28   : > { %p1224_p8 = pneg %p1223_p12 }
  0x2a   : > { %p1231_p0 = pnand %p1230_p10, %p1224_p8 }
  0x2c   : > { %1234 = shalt.err (!%p1231_p0)
}
  0x2d   : > { %1127 = dma.hbm_to_vmem [thread:$0]  (!%p1456_p13), %s1878_s3, 512, %s167_s5, [#allocation10]  }
  0x2e   : > { %s1086_s14 = sshll.u32 %s1467_s7, 11  ;;  %s1103_s15 = sshll.u32 %s1365_s18, 15 }
  0x2f   : > { %s1890_s0 = sld [smem:[#allocation17_spill]]  ;;  %s181_s27 = scalar_lea.vmem [#allocation3], %s1086_s14 }
  0x30   : > { %s188_s28 = sshll.u32 %s181_s27, 4  ;;  %s178_s29 = scalar_lea.sflag [#allocation4], %s1467_s7  ;;  %s1494_s28 = int_to_ptr.vmem [resolvable:$true] %s188_s28 }
  0x31   : > { %p1891_p8 = scmp.ne.s32.totalorder %s1889_s6, 0 }
  0x33   : > { %p1237_p9 = pneg %p1891_p8 }
  0x35   : > { %s1492_s24 = scalar_lea.hbm %s1890_s0, %s1103_s15  ;;  %s1240_s9 = scalar_lea.hbm %s1890_s0, 262144 }
  0x36   : > { %s1235_s30 = scalar_lea.hbm %s1492_s24, 32768  ;;  %p1241_p0 = scmp.lt.s32.totalorder %s1492_s24, %s1890_s0 }
  0x37   : > { %p1236_p5 = scmp.ne.s32.totalorder %s1492_s24, %s1235_s30  ;;  %p1242_p1 = scmp.lt.s32.totalorder %s1240_s9, %s1235_s30 }
  0x39   : > { %p1238_p10 = pnand %p1237_p9, %p1236_p5  ;;  %p1243_p6 = por %p1242_p1, %p1241_p0 }
  0x3b   : > { %p1239_p13 = pneg %p1238_p10 }
  0x3d   : > { %p1244_p7 = pnand %p1243_p6, %p1239_p13 }
  0x3f   : > { %1247 = shalt.err (!%p1244_p7)
}
  0x40   : > { %s1248_s12 = scalar_lea.vmem %s1494_s28, 32768  ;;  %s1369_s13 = smov [#allocation3]  }
  0x41   : > { %p1249_p11 = scmp.ne.s32.totalorder %s1494_s28, %s1248_s12  ;;  %s1253_s14 = sshll.u32 %s1369_s13, 4  ;;  %s1254_s14 = int_to_ptr.vmem [resolvable:$false] %s1253_s14 }
  0x42   : > { %s1255_s15 = scalar_lea.vmem %s1254_s14, 65536  ;;  %p1256_p2 = scmp.lt.s32.totalorder %s1494_s28, %s1254_s14 }
  0x43   : > { %p1251_p4 = pnand %p1249_p11, %p1237_p9  ;;  %p1257_p3 = scmp.lt.s32.totalorder %s1255_s15, %s1248_s12 }
  0x45   : > { %p1252_p12 = pneg %p1251_p4  ;;  %p1258_p5 = por %p1257_p3, %p1256_p2 }
  0x47   : > { %p1259_p10 = pnand %p1258_p5, %p1252_p12 }
  0x49   : > { %1262 = shalt.err (!%p1259_p10)
}
  0x4a   : > { %s1370_s21 = smov 512   ;;  %s1371_s22 = smov 32  }
  0x4b   : > { %1131 = dma.hbm_to_vmem [thread:$0]  (!%p1891_p8), %s1492_s24, 32768, %s1494_s28, %s178_s29, %s1370_s21, %s1370_s21, %s1371_s22  }
  0x4c   : > { %s198_s27 = sand.u32 1, %s1365_s18   ;;  %s1089_s30 = sshll.u32 %s1467_s7, 2 }
  0x4d   : > { %s1104_s5 = sshll.u32 %s1365_s18, 6  ;;  %s202_s8 = scalar_lea.vmem [#allocation6], %s1089_s30 }
  0x4e   : > { %s210_s9 = sshll.u32 %s202_s8, 4  ;;  %s208_s12 = scalar_lea.hbm %s1876_s1, %s1104_s5  ;;  %s211_s9 = int_to_ptr.vmem [resolvable:$true] %s210_s9 }
  0x4f   : > { %s199_s13 = scalar_lea.sflag [#allocation7], %s198_s27  ;;  %s1263_s14 = scalar_lea.hbm %s208_s12, 64 }
  0x50   : > { %p1264_p13 = scmp.ne.s32.totalorder %s208_s12, %s1263_s14  ;;  %s1268_s24 = scalar_lea.hbm %s1876_s1, 512 }
  0x51   : > { %p1269_p6 = scmp.lt.s32.totalorder %s208_s12, %s1876_s1  ;;  %p1270_p7 = scmp.lt.s32.totalorder %s1268_s24, %s1263_s14 }
  0x52   : > { %p1266_p0 = pnand %p1264_p13, %p1237_p9 }
  0x53   : > { %p1271_p11 = por %p1270_p7, %p1269_p6 }
  0x54   : > { %p1267_p1 = pneg %p1266_p0 }
  0x56   : > { %p1272_p4 = pnand %p1271_p11, %p1267_p1 }
  0x58   : > { %1275 = shalt.err (!%p1272_p4)
}
  0x59   : > { %s1276_s28 = scalar_lea.vmem %s211_s9, 64  ;;  %s1372_s29 = smov [#allocation6]  }
  0x5a   : > { %p1277_p12 = scmp.ne.s32.totalorder %s211_s9, %s1276_s28  ;;  %s1281_s21 = sshll.u32 %s1372_s29, 4  ;;  %s1282_s21 = int_to_ptr.vmem [resolvable:$false] %s1281_s21 }
  0x5b   : > { %s1283_s0 = scalar_lea.vmem %s1282_s21, 128  ;;  %p1284_p5 = scmp.lt.s32.totalorder %s211_s9, %s1282_s21 }
  0x5c   : > { %p1279_p2 = pnand %p1277_p12, %p1237_p9  ;;  %p1285_p10 = scmp.lt.s32.totalorder %s1283_s0, %s1276_s28 }
  0x5e   : > { %p1280_p3 = pneg %p1279_p2  ;;  %p1286_p13 = por %p1285_p10, %p1284_p5 }
  0x60   : > { %p1287_p0 = pnand %p1286_p13, %p1280_p3 }
  0x62   : > { %1290 = shalt.err (!%p1287_p0)
}
  0x63   : > { %1134 = dma.hbm_to_vmem [thread:$0]  (!%p1891_p8), %s208_s12, 64, %s211_s9, %s199_s13  }
  0x64   : > { %p1892_p1 = scmp.ne.s32.totalorder %s1887_s26, 0 }
  0x65   : > { %s221_s22 = sand.u32 (!%p1892_p1), 1, %s1357_s16   ;;  %p1893_p9 = scmp.ne.s32.totalorder (!%p1892_p1), %s1886_s25, 0 }
  0x66   : > { %219 = sbr.rel (%p1892_p1) target bundleno = 669 (0x29d), region = 36  ;;  %s1093_s27 = sshll.u32 (!%p1892_p1), %s221_s22, 11 }
  0x67   : > { %s222_s30 = scalar_lea.sflag (!%p1892_p1), [#allocation4], %s221_s22  ;;  %s1546_s5 = scalar_lea.vmem (!%p1892_p1), [#allocation3], %s1093_s27 }
  0x6b   : > { %1332 = dma.done.wait (%p1893_p9), %s222_s30, 32768  }
  0x6c   : > { %1334 = vsyncadd (%p1893_p9), %s222_s30, 4294934528  ;;  %s230_s8 = sand.u32 1, %s1418_s19   ;;  %s1094_s6 = sshll.u32 %s221_s22, 2 }
  0x6d   : > { %s231_s9 = scalar_lea.sflag [#allocation7], %s230_s8  ;;  %s1553_s10 = scalar_lea.vmem [#allocation6], %s1094_s6 }
  0x6e   : > { %1336 = dma.done.wait (%p1893_p9), %s231_s9, 64  }
  0x6f   : > { %1338 = vsyncadd (%p1893_p9), %s231_s9, 4294967232  ;;  %p1894_p8 = scmp.eq.s32.totalorder %s1418_s19, 0 }
  0x71   : > { %1340 = dma.done.wait (%p1894_p8), [#allocation7], 512   ;;  %p1895_p6 = pmov %p1894_p8 }
  0x73   : > { %1342 = vsyncadd (%p1895_p6), [#allocation7], 4294966784  ;;  %p1896_p7 = pmov %p1895_p6 }
  0x74   : > { %p1897_p11 = pmov %p1895_p6 }
  0x75   : > { %1344 = dma.done.wait (%p1896_p7), [#allocation10], 512  }
  0x76   : > { %1346 = vsyncadd (%p1897_p11), [#allocation10], 4294966784  ;;  %p1898_p4 = scmp.ne.s32.totalorder %s1418_s19, 0 }
  0x78   : > { %270 = sbr.rel (%p1898_p4) target bundleno = 298 (0x12a), region = 56 }
  0x7d   : > { %v271_v0 = vld [vmem:[#allocation9] sm:$0xff]  ;;  %v272_v1 = vld [vmem:[#allocation9 + $0x8] sm:$0xff]  ;;  %v273_v2 = vld [vmem:[#allocation9 + $0x10] sm:$0xff] }
  0x7e   : > { %v274_v3 = vld [vmem:[#allocation9 + $0x18] sm:$0xff]  ;;  %v279_v4 = vmul.f32 %v271_v0, %v271_v0  ;;  %v280_v5 = vmul.f32 %v272_v1, %v272_v1  ;;  %v281_v6 = vmul.f32 %v273_v2, %v273_v2  ;;  %v275_v7 = vld [vmem:[#allocation8] sm:$0xff]  ;;  %v276_v8 = vld [vmem:[#allocation8 + $0x8] sm:$0xff] }
  0x7f   : > { %v277_v9 = vld [vmem:[#allocation8 + $0x10] sm:$0xff]  ;;  %v278_v10 = vld [vmem:[#allocation8 + $0x18] sm:$0xff]  ;;  %v283_v11 = vmul.f32 %v275_v7, %v275_v7  ;;  %v284_v12 = vmul.f32 %v276_v8, %v276_v8  ;;  %v282_v13 = vmul.f32 %v274_v3, %v274_v3 }
  0x80   : > { %v287_v14 = vadd.f32 %v280_v5, %v279_v4  ;;  %v285_v15 = vmul.f32 %v277_v9, %v277_v9  ;;  %v286_v18 = vmul.f32 %v278_v10, %v278_v10 }
  0x81   : > { %v292_v16 = vadd.f32 %v284_v12, %v283_v11 }
  0x82   : > { %v288_v17 = vadd.f32 %v287_v14, %v281_v6 }
  0x83   : > { %v293_v19 = vadd.f32 %v292_v16, %v285_v15 }
  0x84   : > { %v289_v20 = vadd.f32 %v288_v17, %v282_v13 }
  0x85   : > { %v294_v21 = vadd.f32 %v293_v19, %v286_v18 }
  0x86   : > { %290 = vadd.xlane.f32.xlu0 %v289_v20 }
  0x8a   : > { %295 = vadd.xlane.f32.xlu0 %v294_v21 }
 0x10f   : > { %v291_v22 = vpop.xlane.xlu0 %290 }
 0x110   : > { %v298_v23 = vmul.f32 0.001953125, %v291_v22 }
 0x112   : > { %v300_v24 = vadd.f32 1e-08, %v298_v23 }
 0x113   : > { %v296_v25 = vpop.xlane.xlu0 %295 }
 0x114   : > { %1179 = vrsqrt.f32 %v300_v24  ;;  %v299_v26 = vmul.f32 0.001953125, %v296_v25 }
 0x116   : > { %v301_v27 = vadd.f32 1e-08, %v299_v26 }
 0x118   : > { %1181 = vrsqrt.f32 %v301_v27 }
 0x121   : > { %v1180_v28 = vpop.eup %1179 }
 0x122   : > { %v304_v29 = vmul.f32 %v1180_v28, %v271_v0  ;;  %v305_v30 = vmul.f32 %v1180_v28, %v272_v1  ;;  %v306_v31 = vmul.f32 %v1180_v28, %v273_v2  ;;  %v307_v32 = vmul.f32 %v1180_v28, %v274_v3 }
 0x124   : > { %312 = vst [vmem:[#allocation2 + $0x30] sm:$0xff] %v304_v29  ;;  %313 = vst [vmem:[#allocation2] sm:$0xff] %v305_v30 }
 0x125   : > { %314 = vst [vmem:[#allocation2 + $0x18] sm:$0xff] %v306_v31  ;;  %315 = vst [vmem:[#allocation2 + $0x10] sm:$0xff] %v307_v32  ;;  %v1182_v33 = vpop.eup %1181 }
 0x126   : > { %v308_v34 = vmul.f32 %v1182_v33, %v275_v7  ;;  %v309_v35 = vmul.f32 %v1182_v33, %v276_v8  ;;  %v310_v36 = vmul.f32 %v1182_v33, %v277_v9  ;;  %v311_v37 = vmul.f32 %v1182_v33, %v278_v10 }
 0x128   : > { %316 = vst [vmem:[#allocation2 + $0x8] sm:$0xff] %v308_v34  ;;  %317 = vst [vmem:[#allocation2 + $0x20] sm:$0xff] %v309_v35 }
 0x129   : > { %318 = vst [vmem:[#allocation2 + $0x28] sm:$0xff] %v310_v36  ;;  %319 = vst [vmem:[#allocation2 + $0x38] sm:$0xff] %v311_v37 }
 0x12a PF: > { %v389_v38 = vld [vmem:[%s1546_s5 + $0x1e8] sm:$0xff]  ;;  %v388_v40 = vld [vmem:[%s1546_s5 + $0x1e0] sm:$0xff]  ;;  %p1098_p12 = scmp.ne.s32.totalorder %s1418_s19, 7 }
 0x12b   : > { %v517_v39 = vld [vmem:[%s1546_s5 + $0x5e8] sm:$0xff]  ;;  %606 = vmatprep.subr.mxu0 %v389_v38  ;;  %v516_v41 = vld [vmem:[%s1546_s5 + $0x5e0] sm:$0xff] }
 0x12c   : > { %683 = vmatprep.subr.mxu1 %v517_v39  ;;  %v385_v42 = vld [vmem:[%s1546_s5 + $0x1c8] sm:$0xff]  ;;  %607 = vmatpush1.msra.mxu0 %v388_v40  ;;  %v384_v44 = vld [vmem:[%s1546_s5 + $0x1c0] sm:$0xff] }
 0x12d   : > { %v513_v43 = vld [vmem:[%s1546_s5 + $0x5c8] sm:$0xff]  ;;  %684 = vmatpush1.msra.mxu1 %v516_v41  ;;  %v512_v45 = vld [vmem:[%s1546_s5 + $0x5c0] sm:$0xff]  ;;  %608 = vmatprep.subr.mxu0 %v385_v42 }
 0x12e   : > { %v381_v46 = vld [vmem:[%s1546_s5 + $0x1a8] sm:$0xff]  ;;  %685 = vmatprep.subr.mxu1 %v513_v43  ;;  %v380_v48 = vld [vmem:[%s1546_s5 + $0x1a0] sm:$0xff]  ;;  %609 = vmatpush1.msra.mxu0 %v384_v44 }
 0x12f   : > { %v509_v47 = vld [vmem:[%s1546_s5 + $0x5a8] sm:$0xff]  ;;  %v508_v49 = vld [vmem:[%s1546_s5 + $0x5a0] sm:$0xff]  ;;  %686 = vmatpush1.msra.mxu1 %v512_v45  ;;  %610 = vmatprep.subr.mxu0 %v381_v46 }
 0x130   : > { %v377_v50 = vld [vmem:[%s1546_s5 + $0x188] sm:$0xff]  ;;  %687 = vmatprep.subr.mxu1 %v509_v47  ;;  %v376_v52 = vld [vmem:[%s1546_s5 + $0x180] sm:$0xff]  ;;  %611 = vmatpush1.msra.mxu0 %v380_v48 }
 0x131   : > { %v505_v51 = vld [vmem:[%s1546_s5 + $0x588] sm:$0xff]  ;;  %v504_v53 = vld [vmem:[%s1546_s5 + $0x580] sm:$0xff]  ;;  %688 = vmatpush1.msra.mxu1 %v508_v49  ;;  %612 = vmatprep.subr.mxu0 %v377_v50 }
 0x132   : > { %v373_v54 = vld [vmem:[%s1546_s5 + $0x168] sm:$0xff]  ;;  %689 = vmatprep.subr.mxu1 %v505_v51  ;;  %v372_v56 = vld [vmem:[%s1546_s5 + $0x160] sm:$0xff]  ;;  %613 = vmatpush1.msra.mxu0 %v376_v52 }
 0x133   : > { %v501_v55 = vld [vmem:[%s1546_s5 + $0x568] sm:$0xff]  ;;  %v500_v57 = vld [vmem:[%s1546_s5 + $0x560] sm:$0xff]  ;;  %690 = vmatpush1.msra.mxu1 %v504_v53  ;;  %614 = vmatprep.subr.mxu0 %v373_v54 }
 0x134   : > { %v369_v58 = vld [vmem:[%s1546_s5 + $0x148] sm:$0xff]  ;;  %691 = vmatprep.subr.mxu1 %v501_v55  ;;  %v368_v60 = vld [vmem:[%s1546_s5 + $0x140] sm:$0xff]  ;;  %615 = vmatpush1.msra.mxu0 %v372_v56 }
 0x135   : > { %v497_v59 = vld [vmem:[%s1546_s5 + $0x548] sm:$0xff]  ;;  %v496_v61 = vld [vmem:[%s1546_s5 + $0x540] sm:$0xff]  ;;  %692 = vmatpush1.msra.mxu1 %v500_v57  ;;  %616 = vmatprep.subr.mxu0 %v369_v58 }
 0x136   : > { %v365_v62 = vld [vmem:[%s1546_s5 + $0x128] sm:$0xff]  ;;  %693 = vmatprep.subr.mxu1 %v497_v59  ;;  %v364_v0 = vld [vmem:[%s1546_s5 + $0x120] sm:$0xff]  ;;  %617 = vmatpush1.msra.mxu0 %v368_v60 }
 0x137   : > { %v493_v63 = vld [vmem:[%s1546_s5 + $0x528] sm:$0xff]  ;;  %v492_v1 = vld [vmem:[%s1546_s5 + $0x520] sm:$0xff]  ;;  %694 = vmatpush1.msra.mxu1 %v496_v61  ;;  %618 = vmatprep.subr.mxu0 %v365_v62 }
 0x138   : > { %v361_v2 = vld [vmem:[%s1546_s5 + $0x108] sm:$0xff]  ;;  %695 = vmatprep.subr.mxu1 %v493_v63  ;;  %v360_v4 = vld [vmem:[%s1546_s5 + $0x100] sm:$0xff]  ;;  %619 = vmatpush1.msra.mxu0 %v364_v0 }
 0x139   : > { %v489_v3 = vld [vmem:[%s1546_s5 + $0x508] sm:$0xff]  ;;  %v488_v5 = vld [vmem:[%s1546_s5 + $0x500] sm:$0xff]  ;;  %696 = vmatpush1.msra.mxu1 %v492_v1  ;;  %620 = vmatprep.subr.mxu0 %v361_v2 }
 0x13a   : > { %v357_v6 = vld [vmem:[%s1546_s5 + $0xe8] sm:$0xff]  ;;  %697 = vmatprep.subr.mxu1 %v489_v3  ;;  %v356_v8 = vld [vmem:[%s1546_s5 + $0xe0] sm:$0xff]  ;;  %621 = vmatpush1.msra.mxu0 %v360_v4 }
 0x13b   : > { %v485_v7 = vld [vmem:[%s1546_s5 + $0x4e8] sm:$0xff]  ;;  %v484_v9 = vld [vmem:[%s1546_s5 + $0x4e0] sm:$0xff]  ;;  %698 = vmatpush1.msra.mxu1 %v488_v5  ;;  %622 = vmatprep.subr.mxu0 %v357_v6 }
 0x13c   : > { %v353_v10 = vld [vmem:[%s1546_s5 + $0xc8] sm:$0xff]  ;;  %699 = vmatprep.subr.mxu1 %v485_v7  ;;  %v352_v12 = vld [vmem:[%s1546_s5 + $0xc0] sm:$0xff]  ;;  %623 = vmatpush1.msra.mxu0 %v356_v8 }
 0x13d   : > { %v481_v11 = vld [vmem:[%s1546_s5 + $0x4c8] sm:$0xff]  ;;  %v480_v13 = vld [vmem:[%s1546_s5 + $0x4c0] sm:$0xff]  ;;  %700 = vmatpush1.msra.mxu1 %v484_v9  ;;  %624 = vmatprep.subr.mxu0 %v353_v10 }
 0x13e   : > { %v349_v14 = vld [vmem:[%s1546_s5 + $0xa8] sm:$0xff]  ;;  %701 = vmatprep.subr.mxu1 %v481_v11  ;;  %v348_v16 = vld [vmem:[%s1546_s5 + $0xa0] sm:$0xff]  ;;  %625 = vmatpush1.msra.mxu0 %v352_v12 }
 0x13f   : > { %v477_v15 = vld [vmem:[%s1546_s5 + $0x4a8] sm:$0xff]  ;;  %v476_v17 = vld [vmem:[%s1546_s5 + $0x4a0] sm:$0xff]  ;;  %702 = vmatpush1.msra.mxu1 %v480_v13  ;;  %626 = vmatprep.subr.mxu0 %v349_v14 }
 0x140   : > { %v345_v18 = vld [vmem:[%s1546_s5 + $0x88] sm:$0xff]  ;;  %703 = vmatprep.subr.mxu1 %v477_v15  ;;  %v344_v20 = vld [vmem:[%s1546_s5 + $0x80] sm:$0xff]  ;;  %627 = vmatpush1.msra.mxu0 %v348_v16 }
 0x141   : > { %v473_v19 = vld [vmem:[%s1546_s5 + $0x488] sm:$0xff]  ;;  %v472_v21 = vld [vmem:[%s1546_s5 + $0x480] sm:$0xff]  ;;  %704 = vmatpush1.msra.mxu1 %v476_v17  ;;  %628 = vmatprep.subr.mxu0 %v345_v18 }
 0x142   : > { %v341_v22 = vld [vmem:[%s1546_s5 + $0x68] sm:$0xff]  ;;  %705 = vmatprep.subr.mxu1 %v473_v19  ;;  %v340_v24 = vld [vmem:[%s1546_s5 + $0x60] sm:$0xff]  ;;  %629 = vmatpush1.msra.mxu0 %v344_v20 }
 0x143   : > { %v469_v23 = vld [vmem:[%s1546_s5 + $0x468] sm:$0xff]  ;;  %v468_v25 = vld [vmem:[%s1546_s5 + $0x460] sm:$0xff]  ;;  %706 = vmatpush1.msra.mxu1 %v472_v21  ;;  %630 = vmatprep.subr.mxu0 %v341_v22 }
 0x144   : > { %v337_v26 = vld [vmem:[%s1546_s5 + $0x48] sm:$0xff]  ;;  %707 = vmatprep.subr.mxu1 %v469_v23  ;;  %v336_v28 = vld [vmem:[%s1546_s5 + $0x40] sm:$0xff]  ;;  %631 = vmatpush1.msra.mxu0 %v340_v24 }
 0x145   : > { %v465_v27 = vld [vmem:[%s1546_s5 + $0x448] sm:$0xff]  ;;  %v464_v29 = vld [vmem:[%s1546_s5 + $0x440] sm:$0xff]  ;;  %708 = vmatpush1.msra.mxu1 %v468_v25  ;;  %632 = vmatprep.subr.mxu0 %v337_v26 }
 0x146   : > { %v333_v30 = vld [vmem:[%s1546_s5 + $0x28] sm:$0xff]  ;;  %709 = vmatprep.subr.mxu1 %v465_v27  ;;  %v332_v32 = vld [vmem:[%s1546_s5 + $0x20] sm:$0xff]  ;;  %633 = vmatpush1.msra.mxu0 %v336_v28 }
 0x147   : > { %v461_v31 = vld [vmem:[%s1546_s5 + $0x428] sm:$0xff]  ;;  %v460_v33 = vld [vmem:[%s1546_s5 + $0x420] sm:$0xff]  ;;  %710 = vmatpush1.msra.mxu1 %v464_v29  ;;  %634 = vmatprep.subr.mxu0 %v333_v30 }
 0x148   : > { %v329_v34 = vld [vmem:[%s1546_s5 + $0x8] sm:$0xff]  ;;  %711 = vmatprep.subr.mxu1 %v461_v31  ;;  %v328_v36 = vld [vmem:[%s1546_s5] sm:$0xff]  ;;  %635 = vmatpush1.msra.mxu0 %v332_v32 }
 0x149   : > { %v457_v35 = vld [vmem:[%s1546_s5 + $0x408] sm:$0xff]  ;;  %v456_v37 = vld [vmem:[%s1546_s5 + $0x400] sm:$0xff]  ;;  %712 = vmatpush1.msra.mxu1 %v460_v33  ;;  %636 = vmatprep.subr.mxu0 %v329_v34 }
 0x14a   : > { %v453_v38 = vld [vmem:[%s1546_s5 + $0x3e8] sm:$0xff]  ;;  %713 = vmatprep.subr.mxu1 %v457_v35  ;;  %v452_v40 = vld [vmem:[%s1546_s5 + $0x3e0] sm:$0xff]  ;;  %637 = vmatpush1.msra.mxu0 %v328_v36 }
 0x14b   : > { %v581_v39 = vld [vmem:[%s1546_s5 + $0x7e8] sm:$0xff]  ;;  %v580_v41 = vld [vmem:[%s1546_s5 + $0x7e0] sm:$0xff]  ;;  %714 = vmatpush1.msra.mxu1 %v456_v37  ;;  %638 = vmatprep.subr.mxu0 %v453_v38 }
 0x14c   : > { %v449_v42 = vld [vmem:[%s1546_s5 + $0x3c8] sm:$0xff]  ;;  %715 = vmatprep.subr.mxu1 %v581_v39  ;;  %v448_v44 = vld [vmem:[%s1546_s5 + $0x3c0] sm:$0xff]  ;;  %639 = vmatpush2.msra.mxu0 %v452_v40  ;;  %v1699_v39 = vld [vmem:[#allocation2 + $0x30] sm:$0xff] }
 0x14d   : > { %v577_v43 = vld [vmem:[%s1546_s5 + $0x7c8] sm:$0xff]  ;;  %v576_v45 = vld [vmem:[%s1546_s5 + $0x7c0] sm:$0xff]  ;;  %716 = vmatpush2.msra.mxu1 %v580_v41  ;;  %640 = vmatprep.subr.mxu0 %v449_v42  ;;  %v1701_v40 = vld [vmem:[#allocation2 + $0x10] sm:$0xff] }
 0x14e   : > { %v445_v46 = vld [vmem:[%s1546_s5 + $0x3a8] sm:$0xff]  ;;  %717 = vmatprep.subr.mxu1 %v577_v43  ;;  %v444_v48 = vld [vmem:[%s1546_s5 + $0x3a0] sm:$0xff]  ;;  %641 = vmatpush2.msra.mxu0 %v448_v44  ;;  %v391_v41 = vld [vmem:[%s1546_s5 + $0x1f8] sm:$0xff] }
 0x14f   : > { %v573_v47 = vld [vmem:[%s1546_s5 + $0x7a8] sm:$0xff]  ;;  %v572_v49 = vld [vmem:[%s1546_s5 + $0x7a0] sm:$0xff]  ;;  %718 = vmatpush2.msra.mxu1 %v576_v45  ;;  %642 = vmatprep.subr.mxu0 %v445_v46  ;;  %v519_v42 = vld [vmem:[%s1546_s5 + $0x5f8] sm:$0xff] }
 0x150   : > { %v441_v50 = vld [vmem:[%s1546_s5 + $0x388] sm:$0xff]  ;;  %719 = vmatprep.subr.mxu1 %v573_v47  ;;  %v440_v52 = vld [vmem:[%s1546_s5 + $0x380] sm:$0xff]  ;;  %643 = vmatpush2.msra.mxu0 %v444_v48  ;;  %v1706_v43 = vld [vmem:[#allocation2 + $0x18] sm:$0xff] }
 0x151   : > { %v569_v51 = vld [vmem:[%s1546_s5 + $0x788] sm:$0xff]  ;;  %v568_v53 = vld [vmem:[%s1546_s5 + $0x780] sm:$0xff]  ;;  %720 = vmatpush2.msra.mxu1 %v572_v49  ;;  %644 = vmatprep.subr.mxu0 %v441_v50  ;;  %v390_v44 = vld [vmem:[%s1546_s5 + $0x1f0] sm:$0xff] }
 0x152   : > { %v437_v54 = vld [vmem:[%s1546_s5 + $0x368] sm:$0xff]  ;;  %721 = vmatprep.subr.mxu1 %v569_v51  ;;  %v436_v56 = vld [vmem:[%s1546_s5 + $0x360] sm:$0xff]  ;;  %645 = vmatpush2.msra.mxu0 %v440_v52  ;;  %v518_v45 = vld [vmem:[%s1546_s5 + $0x5f0] sm:$0xff] }
 0x153   : > { %v565_v55 = vld [vmem:[%s1546_s5 + $0x768] sm:$0xff]  ;;  %v564_v57 = vld [vmem:[%s1546_s5 + $0x760] sm:$0xff]  ;;  %722 = vmatpush2.msra.mxu1 %v568_v53  ;;  %646 = vmatprep.subr.mxu0 %v437_v54  ;;  %v387_v46 = vld [vmem:[%s1546_s5 + $0x1d8] sm:$0xff] }
 0x154   : > { %v433_v58 = vld [vmem:[%s1546_s5 + $0x348] sm:$0xff]  ;;  %723 = vmatprep.subr.mxu1 %v565_v55  ;;  %v432_v60 = vld [vmem:[%s1546_s5 + $0x340] sm:$0xff]  ;;  %647 = vmatpush2.msra.mxu0 %v436_v56  ;;  %v515_v47 = vld [vmem:[%s1546_s5 + $0x5d8] sm:$0xff] }
 0x155   : > { %v561_v59 = vld [vmem:[%s1546_s5 + $0x748] sm:$0xff]  ;;  %v560_v61 = vld [vmem:[%s1546_s5 + $0x740] sm:$0xff]  ;;  %724 = vmatpush2.msra.mxu1 %v564_v57  ;;  %648 = vmatprep.subr.mxu0 %v433_v58  ;;  %v386_v48 = vld [vmem:[%s1546_s5 + $0x1d0] sm:$0xff] }
 0x156   : > { %v429_v62 = vld [vmem:[%s1546_s5 + $0x328] sm:$0xff]  ;;  %725 = vmatprep.subr.mxu1 %v561_v59  ;;  %v428_v0 = vld [vmem:[%s1546_s5 + $0x320] sm:$0xff]  ;;  %649 = vmatpush2.msra.mxu0 %v432_v60  ;;  %v514_v49 = vld [vmem:[%s1546_s5 + $0x5d0] sm:$0xff] }
 0x157   : > { %v557_v63 = vld [vmem:[%s1546_s5 + $0x728] sm:$0xff]  ;;  %v556_v1 = vld [vmem:[%s1546_s5 + $0x720] sm:$0xff]  ;;  %726 = vmatpush2.msra.mxu1 %v560_v61  ;;  %650 = vmatprep.subr.mxu0 %v429_v62  ;;  %v383_v50 = vld [vmem:[%s1546_s5 + $0x1b8] sm:$0xff] }
 0x158   : > { %v425_v2 = vld [vmem:[%s1546_s5 + $0x308] sm:$0xff]  ;;  %727 = vmatprep.subr.mxu1 %v557_v63  ;;  %v424_v4 = vld [vmem:[%s1546_s5 + $0x300] sm:$0xff]  ;;  %651 = vmatpush2.msra.mxu0 %v428_v0  ;;  %v511_v51 = vld [vmem:[%s1546_s5 + $0x5b8] sm:$0xff] }
 0x159   : > { %v553_v3 = vld [vmem:[%s1546_s5 + $0x708] sm:$0xff]  ;;  %v552_v5 = vld [vmem:[%s1546_s5 + $0x700] sm:$0xff]  ;;  %728 = vmatpush2.msra.mxu1 %v556_v1  ;;  %652 = vmatprep.subr.mxu0 %v425_v2  ;;  %v382_v52 = vld [vmem:[%s1546_s5 + $0x1b0] sm:$0xff] }
 0x15a   : > { %v421_v6 = vld [vmem:[%s1546_s5 + $0x2e8] sm:$0xff]  ;;  %729 = vmatprep.subr.mxu1 %v553_v3  ;;  %v420_v8 = vld [vmem:[%s1546_s5 + $0x2e0] sm:$0xff]  ;;  %653 = vmatpush2.msra.mxu0 %v424_v4  ;;  %v510_v53 = vld [vmem:[%s1546_s5 + $0x5b0] sm:$0xff] }
 0x15b   : > { %v549_v7 = vld [vmem:[%s1546_s5 + $0x6e8] sm:$0xff]  ;;  %v548_v9 = vld [vmem:[%s1546_s5 + $0x6e0] sm:$0xff]  ;;  %730 = vmatpush2.msra.mxu1 %v552_v5  ;;  %654 = vmatprep.subr.mxu0 %v421_v6  ;;  %v379_v54 = vld [vmem:[%s1546_s5 + $0x198] sm:$0xff] }
 0x15c   : > { %v417_v10 = vld [vmem:[%s1546_s5 + $0x2c8] sm:$0xff]  ;;  %731 = vmatprep.subr.mxu1 %v549_v7  ;;  %v416_v12 = vld [vmem:[%s1546_s5 + $0x2c0] sm:$0xff]  ;;  %655 = vmatpush2.msra.mxu0 %v420_v8  ;;  %v507_v55 = vld [vmem:[%s1546_s5 + $0x598] sm:$0xff] }
 0x15d   : > { %v545_v11 = vld [vmem:[%s1546_s5 + $0x6c8] sm:$0xff]  ;;  %v544_v13 = vld [vmem:[%s1546_s5 + $0x6c0] sm:$0xff]  ;;  %732 = vmatpush2.msra.mxu1 %v548_v9  ;;  %656 = vmatprep.subr.mxu0 %v417_v10  ;;  %v378_v56 = vld [vmem:[%s1546_s5 + $0x190] sm:$0xff] }
 0x15e   : > { %v413_v14 = vld [vmem:[%s1546_s5 + $0x2a8] sm:$0xff]  ;;  %733 = vmatprep.subr.mxu1 %v545_v11  ;;  %v412_v16 = vld [vmem:[%s1546_s5 + $0x2a0] sm:$0xff]  ;;  %657 = vmatpush2.msra.mxu0 %v416_v12  ;;  %v506_v57 = vld [vmem:[%s1546_s5 + $0x590] sm:$0xff] }
 0x15f   : > { %v541_v15 = vld [vmem:[%s1546_s5 + $0x6a8] sm:$0xff]  ;;  %v540_v17 = vld [vmem:[%s1546_s5 + $0x6a0] sm:$0xff]  ;;  %734 = vmatpush2.msra.mxu1 %v544_v13  ;;  %658 = vmatprep.subr.mxu0 %v413_v14  ;;  %v375_v58 = vld [vmem:[%s1546_s5 + $0x178] sm:$0xff] }
 0x160   : > { %v409_v18 = vld [vmem:[%s1546_s5 + $0x288] sm:$0xff]  ;;  %735 = vmatprep.subr.mxu1 %v541_v15  ;;  %v408_v20 = vld [vmem:[%s1546_s5 + $0x280] sm:$0xff]  ;;  %659 = vmatpush2.msra.mxu0 %v412_v16  ;;  %v503_v59 = vld [vmem:[%s1546_s5 + $0x578] sm:$0xff] }
 0x161   : > { %v537_v19 = vld [vmem:[%s1546_s5 + $0x688] sm:$0xff]  ;;  %v536_v21 = vld [vmem:[%s1546_s5 + $0x680] sm:$0xff]  ;;  %736 = vmatpush2.msra.mxu1 %v540_v17  ;;  %660 = vmatprep.subr.mxu0 %v409_v18  ;;  %v374_v60 = vld [vmem:[%s1546_s5 + $0x170] sm:$0xff] }
 0x162   : > { %v405_v22 = vld [vmem:[%s1546_s5 + $0x268] sm:$0xff]  ;;  %737 = vmatprep.subr.mxu1 %v537_v19  ;;  %v404_v24 = vld [vmem:[%s1546_s5 + $0x260] sm:$0xff]  ;;  %661 = vmatpush2.msra.mxu0 %v408_v20  ;;  %v502_v61 = vld [vmem:[%s1546_s5 + $0x570] sm:$0xff] }
 0x163   : > { %v533_v23 = vld [vmem:[%s1546_s5 + $0x668] sm:$0xff]  ;;  %v532_v25 = vld [vmem:[%s1546_s5 + $0x660] sm:$0xff]  ;;  %738 = vmatpush2.msra.mxu1 %v536_v21  ;;  %662 = vmatprep.subr.mxu0 %v405_v22  ;;  %v371_v62 = vld [vmem:[%s1546_s5 + $0x158] sm:$0xff] }
 0x164   : > { %v401_v26 = vld [vmem:[%s1546_s5 + $0x248] sm:$0xff]  ;;  %739 = vmatprep.subr.mxu1 %v533_v23  ;;  %v400_v28 = vld [vmem:[%s1546_s5 + $0x240] sm:$0xff]  ;;  %663 = vmatpush2.msra.mxu0 %v404_v24  ;;  %v499_v63 = vld [vmem:[%s1546_s5 + $0x558] sm:$0xff] }
 0x165   : > { %v529_v27 = vld [vmem:[%s1546_s5 + $0x648] sm:$0xff]  ;;  %v528_v29 = vld [vmem:[%s1546_s5 + $0x640] sm:$0xff]  ;;  %740 = vmatpush2.msra.mxu1 %v532_v25  ;;  %664 = vmatprep.subr.mxu0 %v401_v26  ;;  %v370_v0 = vld [vmem:[%s1546_s5 + $0x150] sm:$0xff] }
 0x166   : > { %v397_v30 = vld [vmem:[%s1546_s5 + $0x228] sm:$0xff]  ;;  %741 = vmatprep.subr.mxu1 %v529_v27  ;;  %v396_v32 = vld [vmem:[%s1546_s5 + $0x220] sm:$0xff]  ;;  %665 = vmatpush2.msra.mxu0 %v400_v28  ;;  %v498_v1 = vld [vmem:[%s1546_s5 + $0x550] sm:$0xff] }
 0x167   : > { %v525_v31 = vld [vmem:[%s1546_s5 + $0x628] sm:$0xff]  ;;  %v524_v33 = vld [vmem:[%s1546_s5 + $0x620] sm:$0xff]  ;;  %742 = vmatpush2.msra.mxu1 %v528_v29  ;;  %666 = vmatprep.subr.mxu0 %v397_v30  ;;  %v367_v2 = vld [vmem:[%s1546_s5 + $0x138] sm:$0xff] }
 0x168   : > { %v393_v34 = vld [vmem:[%s1546_s5 + $0x208] sm:$0xff]  ;;  %743 = vmatprep.subr.mxu1 %v525_v31  ;;  %v392_v36 = vld [vmem:[%s1546_s5 + $0x200] sm:$0xff]  ;;  %667 = vmatpush2.msra.mxu0 %v396_v32  ;;  %v495_v3 = vld [vmem:[%s1546_s5 + $0x538] sm:$0xff] }
 0x169   : > { %v521_v35 = vld [vmem:[%s1546_s5 + $0x608] sm:$0xff]  ;;  %v1696_v37 = vld [vmem:[#allocation2] sm:$0xff]  ;;  %744 = vmatpush2.msra.mxu1 %v524_v33  ;;  %668 = vmatprep.subr.mxu0 %v393_v34  ;;  %v366_v4 = vld [vmem:[%s1546_s5 + $0x130] sm:$0xff] }
 0x16a   : > { %v520_v38 = vld [vmem:[%s1546_s5 + $0x600] sm:$0xff]  ;;  %745 = vmatprep.subr.mxu1 %v521_v35  ;;  %669 = vmatpush2.msra.mxu0 %v392_v36  ;;  %v494_v5 = vld [vmem:[%s1546_s5 + $0x530] sm:$0xff]  ;;  %v363_v6 = vld [vmem:[%s1546_s5 + $0x118] sm:$0xff] }
 0x16b   : > { %670 = vmatprep.mubr.f32.mxu0 %v1696_v37  ;;  %746 = vmatpush2.msra.mxu1 %v520_v38  ;;  %v491_v7 = vld [vmem:[%s1546_s5 + $0x518] sm:$0xff]  ;;  %v362_v8 = vld [vmem:[%s1546_s5 + $0x110] sm:$0xff] }
 0x16c   : > { %671 = vmatmul.mubr.f32.vlgmr.msra.gmra.mxu0 %v1699_v39  ;;  %747 = vmatprep.mubr.f32.mxu1 %v1701_v40  ;;  %v490_v9 = vld [vmem:[%s1546_s5 + $0x510] sm:$0xff]  ;;  %v359_v10 = vld [vmem:[%s1546_s5 + $0xf8] sm:$0xff] }
 0x16d   : > { %760 = vmatprep.subr.mxu0 %v391_v41  ;;  %837 = vmatprep.subr.mxu1 %v519_v42  ;;  %v487_v11 = vld [vmem:[%s1546_s5 + $0x4f8] sm:$0xff]  ;;  %v358_v12 = vld [vmem:[%s1546_s5 + $0xf0] sm:$0xff] }
 0x16e   : > { %748 = vmatmul.mubr.f32.vlgmr.msra.gmra.mxu1 %v1706_v43  ;;  %761 = vmatpush1.msra.mxu0 %v390_v44  ;;  %v486_v13 = vld [vmem:[%s1546_s5 + $0x4f0] sm:$0xff]  ;;  %v355_v14 = vld [vmem:[%s1546_s5 + $0xd8] sm:$0xff] }
 0x16f   : > { %838 = vmatpush1.msra.mxu1 %v518_v45  ;;  %762 = vmatprep.subr.mxu0 %v387_v46  ;;  %v483_v15 = vld [vmem:[%s1546_s5 + $0x4d8] sm:$0xff]  ;;  %v354_v16 = vld [vmem:[%s1546_s5 + $0xd0] sm:$0xff] }
 0x170   : > { %839 = vmatprep.subr.mxu1 %v515_v47  ;;  %763 = vmatpush1.msra.mxu0 %v386_v48  ;;  %v482_v17 = vld [vmem:[%s1546_s5 + $0x4d0] sm:$0xff]  ;;  %v351_v18 = vld [vmem:[%s1546_s5 + $0xb8] sm:$0xff] }
 0x171   : > { %840 = vmatpush1.msra.mxu1 %v514_v49  ;;  %764 = vmatprep.subr.mxu0 %v383_v50  ;;  %v479_v19 = vld [vmem:[%s1546_s5 + $0x4b8] sm:$0xff]  ;;  %v350_v20 = vld [vmem:[%s1546_s5 + $0xb0] sm:$0xff] }
 0x172   : > { %841 = vmatprep.subr.mxu1 %v511_v51  ;;  %765 = vmatpush1.msra.mxu0 %v382_v52  ;;  %v478_v21 = vld [vmem:[%s1546_s5 + $0x4b0] sm:$0xff]  ;;  %v347_v22 = vld [vmem:[%s1546_s5 + $0x98] sm:$0xff] }
 0x173   : > { %842 = vmatpush1.msra.mxu1 %v510_v53  ;;  %766 = vmatprep.subr.mxu0 %v379_v54  ;;  %v475_v23 = vld [vmem:[%s1546_s5 + $0x498] sm:$0xff]  ;;  %v346_v24 = vld [vmem:[%s1546_s5 + $0x90] sm:$0xff] }
 0x174   : > { %843 = vmatprep.subr.mxu1 %v507_v55  ;;  %767 = vmatpush1.msra.mxu0 %v378_v56  ;;  %v474_v25 = vld [vmem:[%s1546_s5 + $0x490] sm:$0xff]  ;;  %v343_v26 = vld [vmem:[%s1546_s5 + $0x78] sm:$0xff] }
 0x175   : > { %844 = vmatpush1.msra.mxu1 %v506_v57  ;;  %768 = vmatprep.subr.mxu0 %v375_v58  ;;  %v471_v27 = vld [vmem:[%s1546_s5 + $0x478] sm:$0xff]  ;;  %v342_v28 = vld [vmem:[%s1546_s5 + $0x70] sm:$0xff] }
 0x176   : > { %845 = vmatprep.subr.mxu1 %v503_v59  ;;  %769 = vmatpush1.msra.mxu0 %v374_v60  ;;  %v470_v29 = vld [vmem:[%s1546_s5 + $0x470] sm:$0xff]  ;;  %v339_v30 = vld [vmem:[%s1546_s5 + $0x58] sm:$0xff] }
 0x177   : > { %846 = vmatpush1.msra.mxu1 %v502_v61  ;;  %770 = vmatprep.subr.mxu0 %v371_v62  ;;  %v467_v31 = vld [vmem:[%s1546_s5 + $0x458] sm:$0xff]  ;;  %v338_v32 = vld [vmem:[%s1546_s5 + $0x50] sm:$0xff] }
 0x178   : > { %847 = vmatprep.subr.mxu1 %v499_v63  ;;  %771 = vmatpush1.msra.mxu0 %v370_v0  ;;  %v466_v33 = vld [vmem:[%s1546_s5 + $0x450] sm:$0xff]  ;;  %v335_v34 = vld [vmem:[%s1546_s5 + $0x38] sm:$0xff] }
 0x179   : > { %848 = vmatpush1.msra.mxu1 %v498_v1  ;;  %772 = vmatprep.subr.mxu0 %v367_v2  ;;  %v463_v35 = vld [vmem:[%s1546_s5 + $0x438] sm:$0xff]  ;;  %v334_v36 = vld [vmem:[%s1546_s5 + $0x30] sm:$0xff] }
 0x17a   : > { %849 = vmatprep.subr.mxu1 %v495_v3  ;;  %773 = vmatpush1.msra.mxu0 %v366_v4  ;;  %v462_v38 = vld [vmem:[%s1546_s5 + $0x430] sm:$0xff]  ;;  %v331_v41 = vld [vmem:[%s1546_s5 + $0x18] sm:$0xff] }
 0x17b   : > { %850 = vmatpush1.msra.mxu1 %v494_v5  ;;  %774 = vmatprep.subr.mxu0 %v363_v6  ;;  %v459_v42 = vld [vmem:[%s1546_s5 + $0x418] sm:$0xff]  ;;  %v330_v44 = vld [vmem:[%s1546_s5 + $0x10] sm:$0xff] }
 0x17c   : > { %851 = vmatprep.subr.mxu1 %v491_v7  ;;  %775 = vmatpush1.msra.mxu0 %v362_v8  ;;  %v458_v45 = vld [vmem:[%s1546_s5 + $0x410] sm:$0xff]  ;;  %v455_v46 = vld [vmem:[%s1546_s5 + $0x3f8] sm:$0xff] }
 0x17d   : > { %852 = vmatpush1.msra.mxu1 %v490_v9  ;;  %776 = vmatprep.subr.mxu0 %v359_v10  ;;  %v583_v47 = vld [vmem:[%s1546_s5 + $0x7f8] sm:$0xff]  ;;  %v454_v48 = vld [vmem:[%s1546_s5 + $0x3f0] sm:$0xff] }
 0x17e   : > { %853 = vmatprep.subr.mxu1 %v487_v11  ;;  %777 = vmatpush1.msra.mxu0 %v358_v12  ;;  %v582_v49 = vld [vmem:[%s1546_s5 + $0x7f0] sm:$0xff]  ;;  %v451_v50 = vld [vmem:[%s1546_s5 + $0x3d8] sm:$0xff] }
 0x17f   : > { %854 = vmatpush1.msra.mxu1 %v486_v13  ;;  %778 = vmatprep.subr.mxu0 %v355_v14  ;;  %v579_v51 = vld [vmem:[%s1546_s5 + $0x7d8] sm:$0xff]  ;;  %v450_v52 = vld [vmem:[%s1546_s5 + $0x3d0] sm:$0xff] }
 0x180   : > { %855 = vmatprep.subr.mxu1 %v483_v15  ;;  %779 = vmatpush1.msra.mxu0 %v354_v16  ;;  %v578_v53 = vld [vmem:[%s1546_s5 + $0x7d0] sm:$0xff]  ;;  %v447_v54 = vld [vmem:[%s1546_s5 + $0x3b8] sm:$0xff] }
 0x181   : > { %856 = vmatpush1.msra.mxu1 %v482_v17  ;;  %780 = vmatprep.subr.mxu0 %v351_v18  ;;  %v575_v55 = vld [vmem:[%s1546_s5 + $0x7b8] sm:$0xff]  ;;  %v446_v56 = vld [vmem:[%s1546_s5 + $0x3b0] sm:$0xff] }
 0x182   : > { %857 = vmatprep.subr.mxu1 %v479_v19  ;;  %781 = vmatpush1.msra.mxu0 %v350_v20  ;;  %v574_v57 = vld [vmem:[%s1546_s5 + $0x7b0] sm:$0xff]  ;;  %v443_v58 = vld [vmem:[%s1546_s5 + $0x398] sm:$0xff] }
 0x183   : > { %858 = vmatpush1.msra.mxu1 %v478_v21  ;;  %782 = vmatprep.subr.mxu0 %v347_v22  ;;  %v571_v59 = vld [vmem:[%s1546_s5 + $0x798] sm:$0xff]  ;;  %v442_v60 = vld [vmem:[%s1546_s5 + $0x390] sm:$0xff] }
 0x184   : > { %859 = vmatprep.subr.mxu1 %v475_v23  ;;  %783 = vmatpush1.msra.mxu0 %v346_v24  ;;  %v570_v61 = vld [vmem:[%s1546_s5 + $0x790] sm:$0xff]  ;;  %v439_v62 = vld [vmem:[%s1546_s5 + $0x378] sm:$0xff] }
 0x185   : > { %860 = vmatpush1.msra.mxu1 %v474_v25  ;;  %784 = vmatprep.subr.mxu0 %v343_v26  ;;  %v567_v63 = vld [vmem:[%s1546_s5 + $0x778] sm:$0xff]  ;;  %v438_v0 = vld [vmem:[%s1546_s5 + $0x370] sm:$0xff] }
 0x186   : > { %861 = vmatprep.subr.mxu1 %v471_v27  ;;  %785 = vmatpush1.msra.mxu0 %v342_v28  ;;  %v566_v1 = vld [vmem:[%s1546_s5 + $0x770] sm:$0xff]  ;;  %v435_v2 = vld [vmem:[%s1546_s5 + $0x358] sm:$0xff]  ;;  %v325_v28 = vld [vmem:[#allocation2 + $0x20] sm:$0xff] }
 0x187   : > { %862 = vmatpush1.msra.mxu1 %v470_v29  ;;  %786 = vmatprep.subr.mxu0 %v339_v30  ;;  %v563_v3 = vld [vmem:[%s1546_s5 + $0x758] sm:$0xff]  ;;  %v434_v4 = vld [vmem:[%s1546_s5 + $0x350] sm:$0xff] }
 0x188   : > { %863 = vmatprep.subr.mxu1 %v467_v31  ;;  %787 = vmatpush1.msra.mxu0 %v338_v32  ;;  %v562_v5 = vld [vmem:[%s1546_s5 + $0x750] sm:$0xff]  ;;  %v431_v6 = vld [vmem:[%s1546_s5 + $0x338] sm:$0xff]  ;;  %v324_v31 = vld [vmem:[#allocation2 + $0x8] sm:$0xff] }
 0x189   : > { %864 = vmatpush1.msra.mxu1 %v466_v33  ;;  %788 = vmatprep.subr.mxu0 %v335_v34  ;;  %v559_v7 = vld [vmem:[%s1546_s5 + $0x738] sm:$0xff]  ;;  %v430_v8 = vld [vmem:[%s1546_s5 + $0x330] sm:$0xff] }
 0x18a   : > { %865 = vmatprep.subr.mxu1 %v463_v35  ;;  %789 = vmatpush1.msra.mxu0 %v334_v36  ;;  %v558_v9 = vld [vmem:[%s1546_s5 + $0x730] sm:$0xff]  ;;  %v427_v10 = vld [vmem:[%s1546_s5 + $0x318] sm:$0xff] }
 0x18b   : > { %866 = vmatpush1.msra.mxu1 %v462_v38  ;;  %790 = vmatprep.subr.mxu0 %v331_v41  ;;  %v555_v11 = vld [vmem:[%s1546_s5 + $0x718] sm:$0xff]  ;;  %v426_v12 = vld [vmem:[%s1546_s5 + $0x310] sm:$0xff]  ;;  %v326_v41 = vld [vmem:[#allocation2 + $0x28] sm:$0xff] }
 0x18c   : > { %867 = vmatprep.subr.mxu1 %v459_v42  ;;  %791 = vmatpush1.msra.mxu0 %v330_v44  ;;  %v554_v13 = vld [vmem:[%s1546_s5 + $0x710] sm:$0xff]  ;;  %v423_v14 = vld [vmem:[%s1546_s5 + $0x2f8] sm:$0xff] }
 0x18d   : > { %868 = vmatpush1.msra.mxu1 %v458_v45  ;;  %792 = vmatprep.subr.mxu0 %v455_v46  ;;  %v551_v15 = vld [vmem:[%s1546_s5 + $0x6f8] sm:$0xff]  ;;  %v422_v16 = vld [vmem:[%s1546_s5 + $0x2f0] sm:$0xff] }
 0x18e   : > { %869 = vmatprep.subr.mxu1 %v583_v47  ;;  %793 = vmatpush2.msra.mxu0 %v454_v48  ;;  %v550_v17 = vld [vmem:[%s1546_s5 + $0x6f0] sm:$0xff]  ;;  %v419_v18 = vld [vmem:[%s1546_s5 + $0x2d8] sm:$0xff] }
 0x18f   : > { %870 = vmatpush2.msra.mxu1 %v582_v49  ;;  %794 = vmatprep.subr.mxu0 %v451_v50  ;;  %v547_v19 = vld [vmem:[%s1546_s5 + $0x6d8] sm:$0xff]  ;;  %v418_v20 = vld [vmem:[%s1546_s5 + $0x2d0] sm:$0xff] }
 0x190   : > { %871 = vmatprep.subr.mxu1 %v579_v51  ;;  %795 = vmatpush2.msra.mxu0 %v450_v52  ;;  %v546_v21 = vld [vmem:[%s1546_s5 + $0x6d0] sm:$0xff]  ;;  %v415_v22 = vld [vmem:[%s1546_s5 + $0x2b8] sm:$0xff] }
 0x191   : > { %872 = vmatpush2.msra.mxu1 %v578_v53  ;;  %796 = vmatprep.subr.mxu0 %v447_v54  ;;  %v543_v23 = vld [vmem:[%s1546_s5 + $0x6b8] sm:$0xff]  ;;  %v414_v24 = vld [vmem:[%s1546_s5 + $0x2b0] sm:$0xff]  ;;  %v586_v54 = vlaneseq }
 0x192   : > { %873 = vmatprep.subr.mxu1 %v575_v55  ;;  %797 = vmatpush2.msra.mxu0 %v446_v56  ;;  %v542_v25 = vld [vmem:[%s1546_s5 + $0x6b0] sm:$0xff]  ;;  %v411_v26 = vld [vmem:[%s1546_s5 + $0x298] sm:$0xff] }
 0x193   : > { %874 = vmatpush2.msra.mxu1 %v574_v57  ;;  %798 = vmatprep.subr.mxu0 %v443_v58  ;;  %v539_v27 = vld [vmem:[%s1546_s5 + $0x698] sm:$0xff]  ;;  %v410_v29 = vld [vmem:[%s1546_s5 + $0x290] sm:$0xff]  ;;  %v587_v55 = vshrl.u32 %v586_v54, 7  ;;  %v584_v57 = vld [vmem:[%s1553_s10] sm:$0xf] }
 0x194   : > { %875 = vmatprep.subr.mxu1 %v571_v59  ;;  %799 = vmatpush2.msra.mxu0 %v442_v60  ;;  %v538_v30 = vld [vmem:[%s1546_s5 + $0x690] sm:$0xff]  ;;  %v407_v32 = vld [vmem:[%s1546_s5 + $0x278] sm:$0xff] }
 0x195   : > { %876 = vmatpush2.msra.mxu1 %v570_v61  ;;  %800 = vmatprep.subr.mxu0 %v439_v62  ;;  %v535_v33 = vld [vmem:[%s1546_s5 + $0x678] sm:$0xff]  ;;  %v406_v35 = vld [vmem:[%s1546_s5 + $0x270] sm:$0xff]  ;;  %v1841_v56 = vsub.s32 0, %v587_v55  ;;  %v592_v58 = vsub.s32 1, %v587_v55 }
 0x196   : > { %877 = vmatprep.subr.mxu1 %v567_v63  ;;  %801 = vmatpush2.msra.mxu0 %v438_v0  ;;  %v327_v34 = vld [vmem:[#allocation2 + $0x38] sm:$0xff]  ;;  %v534_v36 = vld [vmem:[%s1546_s5 + $0x670] sm:$0xff] }
 0x197   : > { %878 = vmatpush2.msra.mxu1 %v566_v1  ;;  %802 = vmatprep.subr.mxu0 %v435_v2  ;;  %v403_v38 = vld [vmem:[%s1546_s5 + $0x258] sm:$0xff]  ;;  %v402_v44 = vld [vmem:[%s1546_s5 + $0x250] sm:$0xff]  ;;  %v589_v59 = vrot.slane %v584_v57, %v1841_v56 }
 0x198   : > { %879 = vmatprep.subr.mxu1 %v563_v3  ;;  %803 = vmatpush2.msra.mxu0 %v434_v4  ;;  %v531_v42 = vld [vmem:[%s1546_s5 + $0x658] sm:$0xff]  ;;  %v530_v45 = vld [vmem:[%s1546_s5 + $0x650] sm:$0xff] }
 0x199   : > { %880 = vmatpush2.msra.mxu1 %v562_v5  ;;  %804 = vmatprep.subr.mxu0 %v431_v6  ;;  %v399_v46 = vld [vmem:[%s1546_s5 + $0x238] sm:$0xff]  ;;  %v398_v48 = vld [vmem:[%s1546_s5 + $0x230] sm:$0xff] }
 0x19a   : > { %881 = vmatprep.subr.mxu1 %v559_v7  ;;  %805 = vmatpush2.msra.mxu0 %v430_v8  ;;  %v527_v47 = vld [vmem:[%s1546_s5 + $0x638] sm:$0xff]  ;;  %v526_v49 = vld [vmem:[%s1546_s5 + $0x630] sm:$0xff] }
 0x19b   : > { %882 = vmatpush2.msra.mxu1 %v558_v9  ;;  %806 = vmatprep.subr.mxu0 %v427_v10  ;;  %v395_v50 = vld [vmem:[%s1546_s5 + $0x218] sm:$0xff]  ;;  %v394_v52 = vld [vmem:[%s1546_s5 + $0x210] sm:$0xff]  ;;  %v596_v10 = vsub.s32 2, %v587_v55 }
 0x19c   : > { %883 = vmatprep.subr.mxu1 %v555_v11  ;;  %807 = vmatpush2.msra.mxu0 %v426_v12  ;;  %v523_v51 = vld [vmem:[%s1546_s5 + $0x618] sm:$0xff]  ;;  %v522_v53 = vld [vmem:[%s1546_s5 + $0x610] sm:$0xff] }
 0x19d   : > { %884 = vmatpush2.msra.mxu1 %v554_v13  ;;  %808 = vmatprep.subr.mxu0 %v423_v14  ;;  %v600_v13 = vsub.s32 3, %v587_v55 }
 0x19e   : > { %885 = vmatprep.subr.mxu1 %v551_v15  ;;  %809 = vmatpush2.msra.mxu0 %v422_v16  ;;  %v597_v16 = vrot.slane %v584_v57, %v596_v10 }
 0x19f   : > { %886 = vmatpush2.msra.mxu1 %v550_v17  ;;  %810 = vmatprep.subr.mxu0 %v419_v18 }
 0x1a0   : > { %887 = vmatprep.subr.mxu1 %v547_v19  ;;  %811 = vmatpush2.msra.mxu0 %v418_v20  ;;  %v601_v19 = vrot.slane %v584_v57, %v600_v13 }
 0x1a1   : > { %888 = vmatpush2.msra.mxu1 %v546_v21  ;;  %812 = vmatprep.subr.mxu0 %v415_v22 }
 0x1a2   : > { %889 = vmatprep.subr.mxu1 %v543_v23  ;;  %813 = vmatpush2.msra.mxu0 %v414_v24 }
 0x1a3   : > { %890 = vmatpush2.msra.mxu1 %v542_v25  ;;  %814 = vmatprep.subr.mxu0 %v411_v26 }
 0x1a4   : > { %891 = vmatprep.subr.mxu1 %v539_v27  ;;  %676 = vmatprep.mubr.f32.mxu0 %v325_v28 }
 0x1a5   : > { %815 = vmatpush2.msra.mxu0 %v410_v29  ;;  %892 = vmatpush2.msra.mxu1 %v538_v30 }
 0x1a6   : > { %677 = vmatmul.mubr.f32.gmra.mxu0 %v324_v31  ;;  %816 = vmatprep.subr.mxu0 %v407_v32 }
 0x1a7   : > { %893 = vmatprep.subr.mxu1 %v535_v33  ;;  %753 = vmatprep.mubr.f32.mxu1 %v327_v34 }
 0x1a8   : > { %817 = vmatpush2.msra.mxu0 %v406_v35  ;;  %894 = vmatpush2.msra.mxu1 %v534_v36 }
 0x1a9   : > { %818 = vmatprep.subr.mxu0 %v403_v38  ;;  %754 = vmatmul.mubr.f32.gmra.mxu1 %v326_v41 }
 0x1aa   : > { %895 = vmatprep.subr.mxu1 %v531_v42  ;;  %819 = vmatpush2.msra.mxu0 %v402_v44 }
 0x1ab   : > { %896 = vmatpush2.msra.mxu1 %v530_v45  ;;  %820 = vmatprep.subr.mxu0 %v399_v46 }
 0x1ac   : > { %897 = vmatprep.subr.mxu1 %v527_v47  ;;  %821 = vmatpush2.msra.mxu0 %v398_v48 }
 0x1ad   : > { %898 = vmatpush2.msra.mxu1 %v526_v49  ;;  %822 = vmatprep.subr.mxu0 %v395_v50 }
 0x1ae   : > { %899 = vmatprep.subr.mxu1 %v523_v51  ;;  %823 = vmatpush2.msra.mxu0 %v394_v52 }
 0x1af   : > { %824 = vmatprep.mubr.f32.mxu0 %v1696_v37  ;;  %900 = vmatpush2.msra.mxu1 %v522_v53  ;;  %v593_v37 = vrot.slane %v584_v57, %v592_v58 }
 0x1b0   : > { %901 = vmatprep.mubr.f32.mxu1 %v1701_v40  ;;  %825 = vmatmul.mubr.f32.vlgmr.msra.gmra.mxu0 %v1699_v39 }
 0x1b1   : > { %902 = vmatmul.mubr.f32.vlgmr.msra.gmra.mxu1 %v1706_v43  ;;  %830 = vmatprep.mubr.f32.mxu0 %v325_v28 }
 0x1b2   : > { %907 = vmatprep.mubr.f32.mxu1 %v327_v34 }
 0x1b4   : > { %831 = vmatmul.mubr.f32.gmra.mxu0 %v324_v31 }
 0x1b5   : > { %908 = vmatmul.mubr.f32.gmra.mxu1 %v326_v41 }
 0x22c   : > { %v672_v60 = vpop.f32.mrf.mxu0 }
 0x22d   : > { %v673_v61 = vadd.f32 %v672_v60, %v589_v59 }
 0x22e   : > { %v749_v40 = vpop.f32.mrf.mxu1  ;;  %v674_v62 = vpop.f32.mrf.mxu0 }
 0x22f   : > { %v750_v39 = vadd.f32 %v749_v40, %v673_v61  ;;  %v675_v63 = vadd.f32 %v674_v62, %v593_v37 }
 0x230   : > { %v751_v43 = vpop.f32.mrf.mxu1 }
 0x231   : > { %v914_v0 = vmul.f32 0.2, %v750_v39  ;;  %v752_v1 = vadd.f32 %v751_v43, %v675_v63 }
 0x233   : > { %v922_v2 = vmax.f32 %v750_v39, %v914_v0  ;;  %v915_v3 = vmul.f32 0.2, %v752_v1 }
 0x235   : > { %930 = vst [vmem:[#allocation2 + $0x30] sm:$0xff] %v922_v2  ;;  %v923_v4 = vmax.f32 %v752_v1, %v915_v3 }
 0x237   : > { %931 = vst [vmem:[#allocation2] sm:$0xff] %v923_v4 }
 0x266   : > { %v678_v5 = vpop.f32.mrf.mxu0 }
 0x267   : > { %v679_v6 = vadd.f32 %v678_v5, %v589_v59 }
 0x268   : > { %v680_v7 = vpop.f32.mrf.mxu0 }
 0x269   : > { %v681_v8 = vadd.f32 %v680_v7, %v593_v37  ;;  %v755_v9 = vpop.f32.mrf.mxu1 }
 0x26a   : > { %v756_v11 = vadd.f32 %v755_v9, %v679_v6 }
 0x26b   : > { %v757_v12 = vpop.f32.mrf.mxu1 }
 0x26c   : > { %v918_v14 = vmul.f32 0.2, %v756_v11  ;;  %v758_v15 = vadd.f32 %v757_v12, %v681_v8 }
 0x26e   : > { %v926_v17 = vmax.f32 %v756_v11, %v918_v14  ;;  %v919_v18 = vmul.f32 0.2, %v758_v15 }
 0x270   : > { %934 = vst [vmem:[#allocation2 + $0x8] sm:$0xff] %v926_v17  ;;  %v927_v20 = vmax.f32 %v758_v15, %v919_v18  ;;  %v826_v21 = vpop.f32.mrf.mxu0 }
 0x271   : > { %v903_v22 = vpop.f32.mrf.mxu1  ;;  %v827_v23 = vadd.f32 %v826_v21, %v597_v16 }
 0x272   : > { %935 = vst [vmem:[#allocation2 + $0x20] sm:$0xff] %v927_v20  ;;  %v828_v24 = vpop.f32.mrf.mxu0 }
 0x273   : > { %v905_v25 = vpop.f32.mrf.mxu1  ;;  %v904_v26 = vadd.f32 %v903_v22, %v827_v23  ;;  %v829_v27 = vadd.f32 %v828_v24, %v601_v19 }
 0x274   : > { %v832_v28 = vpop.f32.mrf.mxu0 }
 0x275   : > { %v909_v29 = vpop.f32.mrf.mxu1  ;;  %v916_v30 = vmul.f32 0.2, %v904_v26  ;;  %v906_v31 = vadd.f32 %v905_v25, %v829_v27  ;;  %v833_v32 = vadd.f32 %v832_v28, %v597_v16 }
 0x276   : > { %v834_v33 = vpop.f32.mrf.mxu0 }
 0x277   : > { %v924_v34 = vmax.f32 %v904_v26, %v916_v30  ;;  %v917_v35 = vmul.f32 0.2, %v906_v31  ;;  %v910_v36 = vadd.f32 %v909_v29, %v833_v32  ;;  %v835_v38 = vadd.f32 %v834_v33, %v601_v19  ;;  %v911_v41 = vpop.f32.mrf.mxu1 }
 0x279   : > { %932 = vst [vmem:[#allocation2 + $0x18] sm:$0xff] %v924_v34  ;;  %v925_v42 = vmax.f32 %v906_v31, %v917_v35  ;;  %v920_v44 = vmul.f32 0.2, %v910_v36  ;;  %v912_v45 = vadd.f32 %v911_v41, %v835_v38 }
 0x27b   : > { %933 = vst [vmem:[#allocation2 + $0x10] sm:$0xff] %v925_v42  ;;  %v928_v46 = vmax.f32 %v910_v36, %v920_v44  ;;  %v921_v47 = vmul.f32 0.2, %v912_v45  ;;  %941 = sbr.rel (%p1098_p12) target bundleno = 654 (0x28e), region = 60 }
 0x27d   : > { %936 = vst [vmem:[#allocation2 + $0x28] sm:$0xff] %v928_v46  ;;  %v929_v48 = vmax.f32 %v912_v45, %v921_v47 }
 0x27f   : > { %937 = vst [vmem:[#allocation2 + $0x38] sm:$0xff] %v929_v48 }
 0x280   : > { %v942_v49 = vld [vmem:[#allocation2 + $0x30] sm:$0xff]  ;;  %v946_v50 = vld [vmem:[#allocation2 + $0x8] sm:$0xff]  ;;  %v943_v51 = vld [vmem:[#allocation2] sm:$0xff] }
 0x281   : > { %v950_v52 = vmul.f32 1.0606601, %v942_v49  ;;  %v954_v53 = vmul.f32 0.35355338, %v946_v50  ;;  %v947_v54 = vld [vmem:[#allocation2 + $0x20] sm:$0xff]  ;;  %v944_v55 = vld [vmem:[#allocation2 + $0x18] sm:$0xff] }
 0x282   : > { %v951_v57 = vmul.f32 1.0606601, %v943_v51  ;;  %v955_v58 = vmul.f32 0.35355338, %v947_v54  ;;  %v945_v37 = vld [vmem:[#allocation2 + $0x10] sm:$0xff] }
 0x283   : > { %v961_v60 = vrot.slane %v954_v53, %v1841_v56  ;;  %v952_v61 = vmul.f32 1.0606601, %v944_v55  ;;  %v953_v63 = vmul.f32 1.0606601, %v945_v37 }
 0x284   : > { %v948_v59 = vld [vmem:[#allocation2 + $0x28] sm:$0xff]  ;;  %v965_v39 = vrot.slane %v955_v58, %v1841_v56 }
 0x285   : > { %v956_v40 = vmul.f32 0.35355338, %v948_v59  ;;  %v974_v0 = vadd.f32 %v961_v60, %v950_v52 }
 0x286   : > { %v949_v62 = vld [vmem:[#allocation2 + $0x38] sm:$0xff]  ;;  %v975_v2 = vadd.f32 %v965_v39, %v951_v57 }
 0x287   : > { %v957_v43 = vmul.f32 0.35355338, %v949_v62  ;;  %v969_v1 = vrot.slane %v956_v40, %v1841_v56  ;;  %978 = vst [vmem:[#allocation11] sm:$0xff] %v974_v0 }
 0x288   : > { %979 = vst [vmem:[#allocation11 + $0x8] sm:$0xff] %v975_v2 }
 0x289   : > { %v973_v3 = vrot.slane %v957_v43, %v1841_v56  ;;  %v976_v4 = vadd.f32 %v969_v1, %v952_v61 }
 0x28b   : > { %v977_v5 = vadd.f32 %v973_v3, %v953_v63  ;;  %980 = vst [vmem:[#allocation11 + $0x10] sm:$0xff] %v976_v4 }
 0x28d   : > { %981 = vst [vmem:[#allocation11 + $0x18] sm:$0xff] %v977_v5 }
 0x28e PF: > { %p1140_p2 = scmp.eq.s32.totalorder %s1418_s19, 7  ;;  %s1373_s25 = smov [#allocation11]  }
 0x28f   : > { %s989_s26 = sshll.u32 %s1373_s25, 4  ;;  %s990_s26 = int_to_ptr.vmem [resolvable:$true] %s989_s26 }
 0x290   : > { %s1291_s11 = scalar_lea.vmem %s990_s26, 512  ;;  %p1298_p13 = scmp.lt.s32.totalorder %s990_s26, %s990_s26 }
 0x291   : > { %p1292_p3 = scmp.ne.s32.totalorder %s990_s26, %s1291_s11  ;;  %p1299_p0 = scmp.lt.s32.totalorder %s1291_s11, %s1291_s11 }
 0x293   : > { %p1293_p5 = pnand %p1292_p3, %p1140_p2  ;;  %p1300_p1 = por %p1299_p0, %p1298_p13 }
 0x295   : > { %p1294_p10 = pneg %p1293_p5 }
 0x297   : > { %p1301_p9 = pnand %p1300_p1, %p1294_p10 }
 0x299   : > { %1304 = shalt.err (!%p1301_p9)
}
 0x29a   : > { %1118 = dma.vmem_to_hbm [thread:$0]  (%p1140_p2), %s990_s26, 512, %s1879_s4, [#allocation5]  }
 0x29b   : > { %1348 = dma.done.wait (%p1140_p2), [#allocation5], 512  }
 0x29c   : > { %1350 = vsyncadd (%p1140_p2), [#allocation5], 4294966784 }
 0x29d PF: > { %p19_p8 = scmp.ge.s32.totalorder %s1421_s20, 10   ;;  %s1899_s15 = smov %s1357_s16 }
 0x29e   : > { %s1900_s16 = smov %s1361_s17  ;;  %s1901_s17 = smov %s1431_s23 }
 0x29f   : > { %s1902_s18 = smov %s1421_s20  ;;  %21 = sbr.rel (!%p19_p8) target bundleno = 9 (0x9), region = 102 }
 0x2a4   :  { %1002 = vsyncpa [#allocation4], 1 }
 0x2a5   :  { %1004 = vsyncpa [#allocation4 + $0x1], 1 }
 0x2a6   :  { %1005 = vsyncpa [#allocation7], 1 }
 0x2a7   :  { %1007 = vsyncpa [#allocation7 + $0x1], 1 }
 0x2a8   :  { %1008 = vsyncpa [#allocation10], 1 }
 0x2a9   :  { %1009 = vsyncpa [#allocation5], 1 }
 0x2aa   :  { %1011 = vsyncpa [#allocation5 + $0x1], 1 }

</bundles_post_ra>
